<compile_context>
chip_gen: v5e
topology: v5e:2x2
jax: 0.10.0
libtpu: 0.0.40
codegen_flags: <defaults>
</compile_context>

<pallas_src>
import functools
import math

import jax
import jax.numpy as jnp
from jax import lax
from jax.experimental import pallas as pl
from jax.experimental.pallas import tpu as pltpu

INITIAL_PASS = 25


# ----------------------------------------------------------------------------
# Helpers
# ----------------------------------------------------------------------------
def _full_spec(shape):
    return pl.BlockSpec(shape, lambda *args, _s=shape: (0,) * len(_s))


def _ln(x, g, b):
    mu = jnp.mean(x, axis=-1, keepdims=True)
    var = jnp.mean((x - mu) * (x - mu), axis=-1, keepdims=True)
    return (x - mu) * lax.rsqrt(var + 1e-5) * g + b


# ----------------------------------------------------------------------------
# Fused all-layers encoder kernel  (grid = (n_layers,), x resident in VMEM)
# ----------------------------------------------------------------------------
def _fused_layers_kernel(
    x_ref, kbias_ref, bidr_ref, bidc_ref,
    wq_ref, bq_ref, wk_ref, bk_ref, wv_ref, bv_ref, wo_ref, bo_ref,
    ln1g_ref, ln1b_ref, w1_ref, b1_ref, w2_ref, b2_ref, ln2g_ref, ln2b_ref,
    o_ref, x_scr, *, n_heads,
):
    """One post-LN transformer encoder layer per grid step.

    x: (M, E) with M = batch * seq (batch-major rows), held in x_scr across layers.
    Mask is rebuilt in-kernel from O(M) inputs:
      kbias (1, M): 0 for valid keys / -1e9 for padded keys,
      bidr (M, 1) / bidc (1, M): batch id per row/column -> blocks cross-batch pairs.
    """
    layer = pl.program_id(0)

    @pl.when(layer == 0)
    def _():
        x_scr[...] = x_ref[...]

    x = x_scr[...]
    e_dim = x.shape[-1]
    dh = e_dim // n_heads
    scale = 1.0 / math.sqrt(dh)

    add_mask = (
        jnp.where(bidr_ref[...] == bidc_ref[...], 0.0, -1e9) + kbias_ref[...]
    )                                                               # (M, M)

    # qkv projections; fold 1/sqrt(dh) into q once.
    q = (jnp.dot(x, wq_ref[...], preferred_element_type=jnp.float32)
         + bq_ref[...]) * scale
    k = jnp.dot(x, wk_ref[...], preferred_element_type=jnp.float32) + bk_ref[...]
    v = jnp.dot(x, wv_ref[...], preferred_element_type=jnp.float32) + bv_ref[...]
    wo = wo_ref[...]

    # Per-head attention with static dh slices; sum_h (P_h @ V_h) @ Wo_h
    # is exactly concat(heads) @ Wo, so no concatenation is needed.
    attn = jnp.zeros_like(x)
    for h in range(n_heads):
        sl = slice(h * dh, (h + 1) * dh)
        s = lax.dot_general(q[:, sl], k[:, sl], (((1,), (1,)), ((), ())),
                            preferred_element_type=jnp.float32)     # (M, M)
        s = s + add_mask
        s = s - jnp.max(s, axis=-1, keepdims=True)
        p = jnp.exp(s)
        p = p * pl.reciprocal(jnp.sum(p, axis=-1, keepdims=True), approx=True)
        oh = jnp.dot(p, v[:, sl], preferred_element_type=jnp.float32)  # (M, dh)
        attn = attn + jnp.dot(oh, wo[sl, :], preferred_element_type=jnp.float32)
    attn = attn + bo_ref[...]

    h1 = _ln(x + attn, ln1g_ref[...], ln1b_ref[...])

    ff = jnp.dot(h1, w1_ref[...], preferred_element_type=jnp.float32) + b1_ref[...]
    ff = jnp.maximum(ff, 0.0)
    ff = jnp.dot(ff, w2_ref[...], preferred_element_type=jnp.float32) + b2_ref[...]

    y = _ln(h1 + ff, ln2g_ref[...], ln2b_ref[...])
    x_scr[...] = y
    o_ref[...] = y


def encoder_stack(x, kbias, bid_row, bid_col, lw, n_heads):
    M, E = x.shape
    L = lw["wq"].shape[0]
    F = lw["w1"].shape[2]
    kern = functools.partial(_fused_layers_kernel, n_heads=n_heads)

    def const2(shape):
        return pl.BlockSpec(shape, lambda l: (0, 0))

    def perlayer(d1, d2):
        return pl.BlockSpec((pl.Squeezed(), d1, d2), lambda l: (l, 0, 0))

    in_specs = [
        const2((M, E)), const2((1, M)), const2((M, 1)), const2((1, M)),
        perlayer(E, E), perlayer(1, E),   # wq, bq
        perlayer(E, E), perlayer(1, E),   # wk, bk
        perlayer(E, E), perlayer(1, E),   # wv, bv
        perlayer(E, E), perlayer(1, E),   # wo, bo
        perlayer(1, E), perlayer(1, E),   # ln1 g/b
        perlayer(E, F), perlayer(1, F),   # w1, b1
        perlayer(F, E), perlayer(1, E),   # w2, b2
        perlayer(1, E), perlayer(1, E),   # ln2 g/b
    ]
    return pl.pallas_call(
        kern,
        out_shape=jax.ShapeDtypeStruct((M, E), jnp.float32),
        grid=(L,),
        in_specs=in_specs,
        out_specs=pl.BlockSpec((M, E), lambda l: (0, 0)),
        scratch_shapes=[pltpu.VMEM((M, E), jnp.float32)],
        compiler_params=pltpu.CompilerParams(dimension_semantics=("arbitrary",)),
    )(x, kbias, bid_row, bid_col,
      lw["wq"], lw["bq"], lw["wk"], lw["bk"], lw["wv"], lw["bv"],
      lw["wo"], lw["bo"], lw["ln1_g"], lw["ln1_b"],
      lw["w1"], lw["b1"], lw["w2"], lw["b2"], lw["ln2_g"], lw["ln2_b"])


# ----------------------------------------------------------------------------
# Fused post kernels: final LayerNorm -> down -> (VQ) -> up
# ----------------------------------------------------------------------------
def _post_vq_kernel(z_ref, lng_ref, lnb_ref, dw_ref, db_ref, cb_ref,
                    uw_ref, ub_ref, o_ref, idx_ref, loss_ref):
    z = _ln(z_ref[...], lng_ref[...], lnb_ref[...])                  # (M2, E)
    zd = jnp.dot(z, dw_ref[...], preferred_element_type=jnp.float32) + db_ref[...]
    e = cb_ref[...]                                                  # (Nc, Dc)
    m2, dc = zd.shape

    x_sq = jnp.sum(zd * zd, axis=1, keepdims=True)                   # (M2, 1)
    ones_row = jnp.ones((1, dc), jnp.float32)
    e_sq = lax.dot_general(ones_row, e * e, (((1,), (1,)), ((), ())),
                           preferred_element_type=jnp.float32)       # (1, Nc)
    xe = lax.dot_general(zd, e, (((1,), (1,)), ((), ())),
                         preferred_element_type=jnp.float32)         # (M2, Nc)
    d = x_sq - 2.0 * xe + e_sq

    ids = lax.broadcasted_iota(jnp.int32, d.shape, 1)
    mn = jnp.min(d, axis=1, keepdims=True)
    idx = jnp.min(jnp.where(d <= mn, ids, jnp.int32(2 ** 30)),
                  axis=1, keepdims=True)                             # first argmin
    oh = (ids == idx).astype(jnp.float32)                            # one-hot
    qz = jnp.dot(oh, e, preferred_element_type=jnp.float32)          # (M2, Dc)

    diff = qz - zd
    loss_ref[...] = jnp.sum(jnp.sum(diff * diff, axis=1, keepdims=True),
                            axis=0, keepdims=True) * (1.0 / float(m2 * dc))
    idx_ref[...] = idx
    # straight-through: forward value of "inputs + (q - inputs).detach()" == qz
    o_ref[...] = jnp.dot(qz, uw_ref[...], preferred_element_type=jnp.float32) + ub_ref[...]


def _post_novq_kernel(z_ref, lng_ref, lnb_ref, dw_ref, db_ref, uw_ref, ub_ref, o_ref):
    z = _ln(z_ref[...], lng_ref[...], lnb_ref[...])
    zd = jnp.dot(z, dw_ref[...], preferred_element_type=jnp.float32) + db_ref[...]
    o_ref[...] = jnp.dot(zd, uw_ref[...], preferred_element_type=jnp.float32) + ub_ref[...]


def post_vq(z, params):
    M2, E = z.shape
    Dc = params["down_w"].shape[1]
    Nc = params["codebook"].shape[0]
    return pl.pallas_call(
        _post_vq_kernel,
        out_shape=(
            jax.ShapeDtypeStruct((M2, E), jnp.float32),
            jax.ShapeDtypeStruct((M2, 1), jnp.int32),
            jax.ShapeDtypeStruct((1, 1), jnp.float32),
        ),
        grid=(1,),
        in_specs=[
            _full_spec((M2, E)),
            _full_spec((1, E)), _full_spec((1, E)),
            _full_spec((E, Dc)), _full_spec((1, Dc)),
            _full_spec((Nc, Dc)),
            _full_spec((Dc, E)), _full_spec((1, E)),
        ],
        out_specs=(
            _full_spec((M2, E)), _full_spec((M2, 1)), _full_spec((1, 1)),
        ),
    )(z, params["final_ln_g"], params["final_ln_b"],
      params["down_w"], params["down_b"], params["codebook"],
      params["up_w"], params["up_b"])


def post_novq(z, params):
    M2, E = z.shape
    Dc = params["down_w"].shape[1]
    return pl.pallas_call(
        _post_novq_kernel,
        out_shape=jax.ShapeDtypeStruct((M2, E), jnp.float32),
        grid=(1,),
        in_specs=[
            _full_spec((M2, E)),
            _full_spec((1, E)), _full_spec((1, E)),
            _full_spec((E, Dc)), _full_spec((1, Dc)),
            _full_spec((Dc, E)), _full_spec((1, E)),
        ],
        out_specs=_full_spec((M2, E)),
    )(z, params["final_ln_g"], params["final_ln_b"],
      params["down_w"], params["down_b"], params["up_w"], params["up_b"])


# ----------------------------------------------------------------------------
# Model forward
# ----------------------------------------------------------------------------
def param_encoder_forward(params, parameters, mask, epoch, cfg, code_len=4):
    """parameters: (N, S, N_ARGS) int32, mask: (N, S) bool (True = padded)."""
    bs, seqlen, n_args = parameters.shape
    E = cfg["d_model"]

    # param embedding (padding_idx=0 row is zero) + FCN -> plain XLA inside jit
    emb = params["param_embed"][parameters + 1]                   # (N, S, n_args, E)
    emb = emb.reshape(bs, seqlen, n_args * E)
    emb = jnp.dot(emb, params["fcn_w"]) + params["fcn_b"]         # (N, S, E)

    # constant code embeddings + concat along sequence axis (batch-first layout)
    z = jnp.broadcast_to(params["const_embed"][None, :, :], (bs, code_len, E))
    x = jnp.concatenate([z, emb], axis=1)                         # (N, S_tot, E)
    S_tot = x.shape[1]

    # positional encoding (dropout = identity in eval)
    x = x + params["pos_embed"][:S_tot][None, :, :]

    # O(M) mask ingredients: key-padding bias row + batch ids (row / column)
    full_mask = jnp.concatenate(
        [jnp.zeros((bs, code_len), dtype=bool), mask], axis=1)    # (N, S_tot)
    M = bs * S_tot
    kbias = jnp.where(full_mask.reshape(1, M), -1e9, 0.0).astype(jnp.float32)
    bids = (jnp.arange(M, dtype=jnp.int32) // S_tot).astype(jnp.float32)
    bid_row = bids.reshape(M, 1)
    bid_col = bids.reshape(1, M)

    x = x.reshape(M, E).astype(jnp.float32)
    x = encoder_stack(x, kbias, bid_row, bid_col, params["layers"], cfg["n_heads"])

    # outputs[0:code_len] in seq-first order; final encoder LayerNorm is fused
    # into the post kernel (per-position, so applying it only to consumed rows
    # is exact).
    z_enc = x.reshape(bs, S_tot, E)[:, :code_len, :]              # (N, code_len, E)
    z_enc = jnp.transpose(z_enc, (1, 0, 2)).reshape(code_len * bs, E)

    if epoch < INITIAL_PASS:
        q_up = post_novq(z_enc, params)
        vq_loss = 0.0
        selection = None
    else:
        q_up, selection, mse = post_vq(z_enc, params)
        vq_loss = 0.25 * mse[0, 0]                                # commitment cost

    quantized_up = jnp.transpose(q_up.reshape(code_len, bs, E), (1, 0, 2))
    return quantized_up, vq_loss, selection


# ----------------------------------------------------------------------------
# Deterministic parameter init (per-layer weights stacked along a layer axis)
# ----------------------------------------------------------------------------
def init_params(key, cfg, code_len=4, codebook_dim=128):
    E = cfg["d_model"]
    F = cfg["dim_feedforward"]
    L = cfg["n_layers"]
    keys = jax.random.split(key, 8 + L)
    it = iter(keys)

    def nrm(k, shape, std=0.02):
        return (std * jax.random.normal(k, shape)).astype(jnp.float32)

    p = {}
    pe = nrm(next(it), (cfg["args_dim"] + 1, E), 1.0)
    p["param_embed"] = pe.at[0].set(0.0)                 # padding_idx = 0
    p["fcn_w"] = nrm(next(it), (E * cfg["n_args"], E))
    p["fcn_b"] = jnp.zeros((E,), jnp.float32)
    p["const_embed"] = nrm(next(it), (code_len, E), 1.0)
    p["pos_embed"] = nrm(next(it), (cfg["max_total_len"] + code_len, E), 1.0)
    p["down_w"] = nrm(next(it), (E, codebook_dim))
    p["down_b"] = jnp.zeros((1, codebook_dim), jnp.float32)
    p["up_w"] = nrm(next(it), (codebook_dim, E))
    p["up_b"] = jnp.zeros((1, E), jnp.float32)
    p["codebook"] = nrm(next(it), (cfg["num_code"], codebook_dim), 1.0)
    p["final_ln_g"] = jnp.ones((1, E), jnp.float32)
    p["final_ln_b"] = jnp.zeros((1, E), jnp.float32)

    per_layer = []
    for _ in range(L):
        lk = jax.random.split(next(it), 6)
        per_layer.append(dict(
            wq=nrm(lk[0], (E, E)), wk=nrm(lk[1], (E, E)),
            wv=nrm(lk[2], (E, E)), wo=nrm(lk[3], (E, E)),
            w1=nrm(lk[4], (E, F)), w2=nrm(lk[5], (F, E)),
        ))

    def stack(name):
        return jnp.stack([lp[name] for lp in per_layer], axis=0)

    p["layers"] = dict(
        wq=stack("wq"), bq=jnp.zeros((L, 1, E), jnp.float32),
        wk=stack("wk"), bk=jnp.zeros((L, 1, E), jnp.float32),
        wv=stack("wv"), bv=jnp.zeros((L, 1, E), jnp.float32),
        wo=stack("wo"), bo=jnp.zeros((L, 1, E), jnp.float32),
        ln1_g=jnp.ones((L, 1, E), jnp.float32),
        ln1_b=jnp.zeros((L, 1, E), jnp.float32),
        w1=stack("w1"), b1=jnp.zeros((L, 1, F), jnp.float32),
        w2=stack("w2"), b2=jnp.zeros((L, 1, E), jnp.float32),
        ln2_g=jnp.ones((L, 1, E), jnp.float32),
        ln2_b=jnp.zeros((L, 1, E), jnp.float32),
    )
    return p


# ----------------------------------------------------------------------------
# Main
# ----------------------------------------------------------------------------
if __name__ == "__main__":
    cfg = dict(
        d_model=32,
        dropout=0.1,
        max_total_len=8,
        num_code=8,
        args_dim=16,
        n_args=4,
        n_heads=4,
        dim_feedforward=64,
        n_layers=2,
    )
    code_len = 4
    bs, seqlen = 2, cfg["max_total_len"]

    root = jax.random.PRNGKey(0)
    k_param, k_inp = jax.random.split(root)
    params = init_params(k_param, cfg, code_len=code_len)

    # parameters in [-1, args_dim-1] so (parameters + 1) indexes [0, args_dim]
    parameters = jax.random.randint(
        k_inp, (bs, seqlen, cfg["n_args"]), minval=-1, maxval=cfg["args_dim"]
    ).astype(jnp.int32)
    mask = jnp.zeros((bs, seqlen), dtype=bool).at[1, -2:].set(True)

    # epoch >= INITIAL_PASS exercises the VQ-VAE codebook path
    fwd_vq = jax.jit(lambda prm, pars, msk: param_encoder_forward(
        prm, pars, msk, epoch=30, cfg=cfg, code_len=code_len))
    # epoch < INITIAL_PASS exercises the warm-up (no-VQ) path
    fwd_warm = jax.jit(lambda prm, pars, msk: param_encoder_forward(
        prm, pars, msk, epoch=0, cfg=cfg, code_len=code_len))

    quantized_up, vq_loss, selection = fwd_vq(params, parameters, mask)
    q_warm, warm_loss, warm_sel = fwd_warm(params, parameters, mask)

    jax.block_until_ready((quantized_up, vq_loss, selection, q_warm))

    assert quantized_up.shape == (bs, code_len, cfg["d_model"])
    assert q_warm.shape == (bs, code_len, cfg["d_model"])
    assert selection.shape == (code_len * bs, 1)
    assert warm_sel is None
    assert bool(jnp.isfinite(vq_loss))
    print("KERNEL_OK")
</pallas_src>

<mosaic_0001>
module attributes {stable_mosaic.version = 11 : i64} {
  func.func @_fused_layers_kernel(%arg0: i32, %arg1: memref<24x32xf32, #tpu.memory_space<vmem>>, %arg2: memref<1x24xf32, #tpu.memory_space<vmem>>, %arg3: memref<24x1xf32, #tpu.memory_space<vmem>>, %arg4: memref<1x24xf32, #tpu.memory_space<vmem>>, %arg5: memref<1x32x32xf32, #tpu.memory_space<vmem>>, %arg6: memref<1x1x32xf32, #tpu.memory_space<vmem>>, %arg7: memref<1x32x32xf32, #tpu.memory_space<vmem>>, %arg8: memref<1x1x32xf32, #tpu.memory_space<vmem>>, %arg9: memref<1x32x32xf32, #tpu.memory_space<vmem>>, %arg10: memref<1x1x32xf32, #tpu.memory_space<vmem>>, %arg11: memref<1x32x32xf32, #tpu.memory_space<vmem>>, %arg12: memref<1x1x32xf32, #tpu.memory_space<vmem>>, %arg13: memref<1x1x32xf32, #tpu.memory_space<vmem>>, %arg14: memref<1x1x32xf32, #tpu.memory_space<vmem>>, %arg15: memref<1x32x64xf32, #tpu.memory_space<vmem>>, %arg16: memref<1x1x64xf32, #tpu.memory_space<vmem>>, %arg17: memref<1x64x32xf32, #tpu.memory_space<vmem>>, %arg18: memref<1x1x32xf32, #tpu.memory_space<vmem>>, %arg19: memref<1x1x32xf32, #tpu.memory_space<vmem>>, %arg20: memref<1x1x32xf32, #tpu.memory_space<vmem>>, %arg21: memref<24x32xf32, #tpu.memory_space<vmem>>, %arg22: memref<24x32xf32, #tpu.memory_space<vmem>>) attributes {dimension_semantics = [#tpu.dimension_semantics<arbitrary>], iteration_bounds = array<i64: 2>, scalar_prefetch = 0 : i64, scratch_operands = 1 : i64, tpu.core_type = #tpu.core_type<tc>, window_params = [{pipeline_mode = #tpu.pipeline_mode<synchronous>, transform_indices = @transform_0, window_bounds = array<i64: 24, 32>}, {pipeline_mode = #tpu.pipeline_mode<synchronous>, transform_indices = @transform_1, window_bounds = array<i64: 1, 24>}, {pipeline_mode = #tpu.pipeline_mode<synchronous>, transform_indices = @transform_2, window_bounds = array<i64: 24, 1>}, {pipeline_mode = #tpu.pipeline_mode<synchronous>, transform_indices = @transform_3, window_bounds = array<i64: 1, 24>}, {transform_indices = @transform_4, window_bounds = array<i64: 1, 32, 32>}, {transform_indices = @transform_5, window_bounds = array<i64: 1, 1, 32>}, {transform_indices = @transform_6, window_bounds = array<i64: 1, 32, 32>}, {transform_indices = @transform_7, window_bounds = array<i64: 1, 1, 32>}, {transform_indices = @transform_8, window_bounds = array<i64: 1, 32, 32>}, {transform_indices = @transform_9, window_bounds = array<i64: 1, 1, 32>}, {transform_indices = @transform_10, window_bounds = array<i64: 1, 32, 32>}, {transform_indices = @transform_11, window_bounds = array<i64: 1, 1, 32>}, {transform_indices = @transform_12, window_bounds = array<i64: 1, 1, 32>}, {transform_indices = @transform_13, window_bounds = array<i64: 1, 1, 32>}, {transform_indices = @transform_14, window_bounds = array<i64: 1, 32, 64>}, {transform_indices = @transform_15, window_bounds = array<i64: 1, 1, 64>}, {transform_indices = @transform_16, window_bounds = array<i64: 1, 64, 32>}, {transform_indices = @transform_17, window_bounds = array<i64: 1, 1, 32>}, {transform_indices = @transform_18, window_bounds = array<i64: 1, 1, 32>}, {transform_indices = @transform_19, window_bounds = array<i64: 1, 1, 32>}, {pipeline_mode = #tpu.pipeline_mode<synchronous>, transform_indices = @transform_20, window_bounds = array<i64: 24, 32>}]} {
    %c0_i32 = arith.constant 0 : i32
    %0 = arith.cmpi eq, %arg0, %c0_i32 : i32
    %1 = arith.extui %0 : i1 to i32
    %c0_i32_0 = arith.constant 0 : i32
    %2 = arith.cmpi ne, %1, %c0_i32_0 : i32
    scf.if %2 {
      %c0_99 = arith.constant 0 : index
      %c0_100 = arith.constant 0 : index
      %197 = vector.load %arg1[%c0_99, %c0_100] : memref<24x32xf32, #tpu.memory_space<vmem>>, vector<24x32xf32>
      %c0_101 = arith.constant 0 : index
      %c0_102 = arith.constant 0 : index
      %198 = vector.load %arg22[%c0_101, %c0_102] : memref<24x32xf32, #tpu.memory_space<vmem>>, vector<24x32xf32>
      tpu.vector_store %arg22[%c0_101, %c0_102], %197 {strides = array<i32>} : memref<24x32xf32, #tpu.memory_space<vmem>>, vector<24x32xf32>,
    } else {
    }
    %c0 = arith.constant 0 : index
    %c0_1 = arith.constant 0 : index
    %3 = vector.load %arg22[%c0, %c0_1] : memref<24x32xf32, #tpu.memory_space<vmem>>, vector<24x32xf32>
    %c0_2 = arith.constant 0 : index
    %c0_3 = arith.constant 0 : index
    %4 = vector.load %arg3[%c0_2, %c0_3] : memref<24x1xf32, #tpu.memory_space<vmem>>, vector<24x1xf32>
    %c0_4 = arith.constant 0 : index
    %c0_5 = arith.constant 0 : index
    %5 = vector.load %arg4[%c0_4, %c0_5] : memref<1x24xf32, #tpu.memory_space<vmem>>, vector<1x24xf32>
    %6 = vector.broadcast %4 : vector<24x1xf32> to vector<24x24xf32>
    %7 = vector.broadcast %5 : vector<1x24xf32> to vector<24x24xf32>
    %8 = arith.cmpf oeq, %6, %7 : vector<24x24xf32>
    %cst = arith.constant 0.000000e+00 : f32
    %cst_6 = arith.constant -1.000000e+09 : f32
    %9 = vector.broadcast %cst : f32 to vector<24x24xf32>
    %10 = vector.broadcast %cst_6 : f32 to vector<24x24xf32>
    %11 = arith.select %8, %9, %10 : vector<24x24xi1>, vector<24x24xf32>
    %c0_7 = arith.constant 0 : index
    %c0_8 = arith.constant 0 : index
    %12 = vector.load %arg2[%c0_7, %c0_8] : memref<1x24xf32, #tpu.memory_space<vmem>>, vector<1x24xf32>
    %13 = vector.broadcast %12 : vector<1x24xf32> to vector<24x24xf32>
    %14 = arith.addf %11, %13 : vector<24x24xf32>
    %c0_9 = arith.constant 0 : index
    %c0_10 = arith.constant 0 : index
    %c0_11 = arith.constant 0 : index
    %15 = vector.load %arg5[%c0_9, %c0_10, %c0_11] : memref<1x32x32xf32, #tpu.memory_space<vmem>>, vector<1x32x32xf32>
    %16 = vector.shape_cast %15 : vector<1x32x32xf32> to vector<32x32xf32>
    %cst_12 = arith.constant dense<0.000000e+00> : vector<24x32xf32>
    %17 = tpu.matmul %3, %16, %cst_12 {dimension_numbers = #tpu.dot_dimension_numbers<[1], [0], [0], [1], [0, 0, 1, 1], [], []>} : vector<24x32xf32>, vector<32x32xf32>, vector<24x32xf32> -> vector<24x32xf32>
    %c0_13 = arith.constant 0 : index
    %c0_14 = arith.constant 0 : index
    %c0_15 = arith.constant 0 : index
    %18 = vector.load %arg6[%c0_13, %c0_14, %c0_15] : memref<1x1x32xf32, #tpu.memory_space<vmem>>, vector<1x1x32xf32>
    %19 = vector.shape_cast %18 : vector<1x1x32xf32> to vector<1x32xf32>
    %20 = vector.broadcast %19 : vector<1x32xf32> to vector<24x32xf32>
    %21 = arith.addf %17, %20 : vector<24x32xf32>
    %cst_16 = arith.constant 0.353553385 : f32
    %22 = vector.broadcast %cst_16 : f32 to vector<24x32xf32>
    %23 = arith.mulf %21, %22 : vector<24x32xf32>
    %c0_17 = arith.constant 0 : index
    %c0_18 = arith.constant 0 : index
    %c0_19 = arith.constant 0 : index
    %24 = vector.load %arg7[%c0_17, %c0_18, %c0_19] : memref<1x32x32xf32, #tpu.memory_space<vmem>>, vector<1x32x32xf32>
    %25 = vector.shape_cast %24 : vector<1x32x32xf32> to vector<32x32xf32>
    %cst_20 = arith.constant dense<0.000000e+00> : vector<24x32xf32>
    %26 = tpu.matmul %3, %25, %cst_20 {dimension_numbers = #tpu.dot_dimension_numbers<[1], [0], [0], [1], [0, 0, 1, 1], [], []>} : vector<24x32xf32>, vector<32x32xf32>, vector<24x32xf32> -> vector<24x32xf32>
    %c0_21 = arith.constant 0 : index
    %c0_22 = arith.constant 0 : index
    %c0_23 = arith.constant 0 : index
    %27 = vector.load %arg8[%c0_21, %c0_22, %c0_23] : memref<1x1x32xf32, #tpu.memory_space<vmem>>, vector<1x1x32xf32>
    %28 = vector.shape_cast %27 : vector<1x1x32xf32> to vector<1x32xf32>
    %29 = vector.broadcast %28 : vector<1x32xf32> to vector<24x32xf32>
    %30 = arith.addf %26, %29 : vector<24x32xf32>
    %c0_24 = arith.constant 0 : index
    %c0_25 = arith.constant 0 : index
    %c0_26 = arith.constant 0 : index
    %31 = vector.load %arg9[%c0_24, %c0_25, %c0_26] : memref<1x32x32xf32, #tpu.memory_space<vmem>>, vector<1x32x32xf32>
    %32 = vector.shape_cast %31 : vector<1x32x32xf32> to vector<32x32xf32>
    %cst_27 = arith.constant dense<0.000000e+00> : vector<24x32xf32>
    %33 = tpu.matmul %3, %32, %cst_27 {dimension_numbers = #tpu.dot_dimension_numbers<[1], [0], [0], [1], [0, 0, 1, 1], [], []>} : vector<24x32xf32>, vector<32x32xf32>, vector<24x32xf32> -> vector<24x32xf32>
    %c0_28 = arith.constant 0 : index
    %c0_29 = arith.constant 0 : index
    %c0_30 = arith.constant 0 : index
    %34 = vector.load %arg10[%c0_28, %c0_29, %c0_30] : memref<1x1x32xf32, #tpu.memory_space<vmem>>, vector<1x1x32xf32>
    %35 = vector.shape_cast %34 : vector<1x1x32xf32> to vector<1x32xf32>
    %36 = vector.broadcast %35 : vector<1x32xf32> to vector<24x32xf32>
    %37 = arith.addf %33, %36 : vector<24x32xf32>
    %c0_31 = arith.constant 0 : index
    %c0_32 = arith.constant 0 : index
    %c0_33 = arith.constant 0 : index
    %38 = vector.load %arg11[%c0_31, %c0_32, %c0_33] : memref<1x32x32xf32, #tpu.memory_space<vmem>>, vector<1x32x32xf32>
    %39 = vector.shape_cast %38 : vector<1x32x32xf32> to vector<32x32xf32>
    %cst_34 = arith.constant 0.000000e+00 : f32
    %40 = vector.broadcast %cst_34 : f32 to vector<24x32xf32>
    %41 = vector.extract_strided_slice %23 {offsets = [0, 0], sizes = [24, 8], strides = [1, 1]} : vector<24x32xf32> to vector<24x8xf32>
    %42 = vector.extract_strided_slice %30 {offsets = [0, 0], sizes = [24, 8], strides = [1, 1]} : vector<24x32xf32> to vector<24x8xf32>
    %cst_35 = arith.constant dense<0.000000e+00> : vector<24x24xf32>
    %43 = tpu.matmul %41, %42, %cst_35 {dimension_numbers = #tpu.dot_dimension_numbers<[1], [1], [0], [0], [0, 0, 1, 0], [], []>} : vector<24x8xf32>, vector<24x8xf32>, vector<24x24xf32> -> vector<24x24xf32>
    %44 = arith.addf %43, %14 : vector<24x24xf32>
    %cst_36 = arith.constant dense<0xFF800000> : vector<24xf32>
    %45 = vector.multi_reduction <maximumf>, %44, %cst_36 [1] : vector<24x24xf32> to vector<24xf32>
    %46 = vector.shape_cast %45 : vector<24xf32> to vector<24x1xf32>
    %47 = vector.broadcast %46 : vector<24x1xf32> to vector<24x24xf32>
    %48 = arith.subf %44, %47 : vector<24x24xf32>
    %49 = math.exp %48 : vector<24x24xf32>
    %cst_37 = arith.constant dense<0.000000e+00> : vector<24xf32>
    %50 = vector.multi_reduction <add>, %49, %cst_37 [1] : vector<24x24xf32> to vector<24xf32>
    %51 = vector.shape_cast %50 : vector<24xf32> to vector<24x1xf32>
    %52 = tpu.reciprocal %51 {approx = true} : vector<24x1xf32> -> vector<24x1xf32>
    %53 = vector.broadcast %52 : vector<24x1xf32> to vector<24x24xf32>
    %54 = arith.mulf %49, %53 : vector<24x24xf32>
    %55 = vector.extract_strided_slice %37 {offsets = [0, 0], sizes = [24, 8], strides = [1, 1]} : vector<24x32xf32> to vector<24x8xf32>
    %cst_38 = arith.constant dense<0.000000e+00> : vector<24x8xf32>
    %56 = tpu.matmul %54, %55, %cst_38 {dimension_numbers = #tpu.dot_dimension_numbers<[1], [0], [0], [1], [0, 0, 1, 1], [], []>} : vector<24x24xf32>, vector<24x8xf32>, vector<24x8xf32> -> vector<24x8xf32>
    %57 = vector.extract_strided_slice %39 {offsets = [0, 0], sizes = [8, 32], strides = [1, 1]} : vector<32x32xf32> to vector<8x32xf32>
    %cst_39 = arith.constant dense<0.000000e+00> : vector<24x32xf32>
    %58 = tpu.matmul %56, %57, %cst_39 {dimension_numbers = #tpu.dot_dimension_numbers<[1], [0], [0], [1], [0, 0, 1, 1], [], []>} : vector<24x8xf32>, vector<8x32xf32>, vector<24x32xf32> -> vector<24x32xf32>
    %59 = arith.addf %40, %58 : vector<24x32xf32>
    %60 = vector.extract_strided_slice %23 {offsets = [0, 8], sizes = [24, 8], strides = [1, 1]} : vector<24x32xf32> to vector<24x8xf32>
    %61 = vector.extract_strided_slice %30 {offsets = [0, 8], sizes = [24, 8], strides = [1, 1]} : vector<24x32xf32> to vector<24x8xf32>
    %cst_40 = arith.constant dense<0.000000e+00> : vector<24x24xf32>
    %62 = tpu.matmul %60, %61, %cst_40 {dimension_numbers = #tpu.dot_dimension_numbers<[1], [1], [0], [0], [0, 0, 1, 0], [], []>} : vector<24x8xf32>, vector<24x8xf32>, vector<24x24xf32> -> vector<24x24xf32>
    %63 = arith.addf %62, %14 : vector<24x24xf32>
    %cst_41 = arith.constant dense<0xFF800000> : vector<24xf32>
    %64 = vector.multi_reduction <maximumf>, %63, %cst_41 [1] : vector<24x24xf32> to vector<24xf32>
    %65 = vector.shape_cast %64 : vector<24xf32> to vector<24x1xf32>
    %66 = vector.broadcast %65 : vector<24x1xf32> to vector<24x24xf32>
    %67 = arith.subf %63, %66 : vector<24x24xf32>
    %68 = math.exp %67 : vector<24x24xf32>
    %cst_42 = arith.constant dense<0.000000e+00> : vector<24xf32>
    %69 = vector.multi_reduction <add>, %68, %cst_42 [1] : vector<24x24xf32> to vector<24xf32>
    %70 = vector.shape_cast %69 : vector<24xf32> to vector<24x1xf32>
    %71 = tpu.reciprocal %70 {approx = true} : vector<24x1xf32> -> vector<24x1xf32>
    %72 = vector.broadcast %71 : vector<24x1xf32> to vector<24x24xf32>
    %73 = arith.mulf %68, %72 : vector<24x24xf32>
    %74 = vector.extract_strided_slice %37 {offsets = [0, 8], sizes = [24, 8], strides = [1, 1]} : vector<24x32xf32> to vector<24x8xf32>
    %cst_43 = arith.constant dense<0.000000e+00> : vector<24x8xf32>
    %75 = tpu.matmul %73, %74, %cst_43 {dimension_numbers = #tpu.dot_dimension_numbers<[1], [0], [0], [1], [0, 0, 1, 1], [], []>} : vector<24x24xf32>, vector<24x8xf32>, vector<24x8xf32> -> vector<24x8xf32>
    %76 = vector.extract_strided_slice %39 {offsets = [8, 0], sizes = [8, 32], strides = [1, 1]} : vector<32x32xf32> to vector<8x32xf32>
    %cst_44 = arith.constant dense<0.000000e+00> : vector<24x32xf32>
    %77 = tpu.matmul %75, %76, %cst_44 {dimension_numbers = #tpu.dot_dimension_numbers<[1], [0], [0], [1], [0, 0, 1, 1], [], []>} : vector<24x8xf32>, vector<8x32xf32>, vector<24x32xf32> -> vector<24x32xf32>
    %78 = arith.addf %59, %77 : vector<24x32xf32>
    %79 = vector.extract_strided_slice %23 {offsets = [0, 16], sizes = [24, 8], strides = [1, 1]} : vector<24x32xf32> to vector<24x8xf32>
    %80 = vector.extract_strided_slice %30 {offsets = [0, 16], sizes = [24, 8], strides = [1, 1]} : vector<24x32xf32> to vector<24x8xf32>
    %cst_45 = arith.constant dense<0.000000e+00> : vector<24x24xf32>
    %81 = tpu.matmul %79, %80, %cst_45 {dimension_numbers = #tpu.dot_dimension_numbers<[1], [1], [0], [0], [0, 0, 1, 0], [], []>} : vector<24x8xf32>, vector<24x8xf32>, vector<24x24xf32> -> vector<24x24xf32>
    %82 = arith.addf %81, %14 : vector<24x24xf32>
    %cst_46 = arith.constant dense<0xFF800000> : vector<24xf32>
    %83 = vector.multi_reduction <maximumf>, %82, %cst_46 [1] : vector<24x24xf32> to vector<24xf32>
    %84 = vector.shape_cast %83 : vector<24xf32> to vector<24x1xf32>
    %85 = vector.broadcast %84 : vector<24x1xf32> to vector<24x24xf32>
    %86 = arith.subf %82, %85 : vector<24x24xf32>
    %87 = math.exp %86 : vector<24x24xf32>
    %cst_47 = arith.constant dense<0.000000e+00> : vector<24xf32>
    %88 = vector.multi_reduction <add>, %87, %cst_47 [1] : vector<24x24xf32> to vector<24xf32>
    %89 = vector.shape_cast %88 : vector<24xf32> to vector<24x1xf32>
    %90 = tpu.reciprocal %89 {approx = true} : vector<24x1xf32> -> vector<24x1xf32>
    %91 = vector.broadcast %90 : vector<24x1xf32> to vector<24x24xf32>
    %92 = arith.mulf %87, %91 : vector<24x24xf32>
    %93 = vector.extract_strided_slice %37 {offsets = [0, 16], sizes = [24, 8], strides = [1, 1]} : vector<24x32xf32> to vector<24x8xf32>
    %cst_48 = arith.constant dense<0.000000e+00> : vector<24x8xf32>
    %94 = tpu.matmul %92, %93, %cst_48 {dimension_numbers = #tpu.dot_dimension_numbers<[1], [0], [0], [1], [0, 0, 1, 1], [], []>} : vector<24x24xf32>, vector<24x8xf32>, vector<24x8xf32> -> vector<24x8xf32>
    %95 = vector.extract_strided_slice %39 {offsets = [16, 0], sizes = [8, 32], strides = [1, 1]} : vector<32x32xf32> to vector<8x32xf32>
    %cst_49 = arith.constant dense<0.000000e+00> : vector<24x32xf32>
    %96 = tpu.matmul %94, %95, %cst_49 {dimension_numbers = #tpu.dot_dimension_numbers<[1], [0], [0], [1], [0, 0, 1, 1], [], []>} : vector<24x8xf32>, vector<8x32xf32>, vector<24x32xf32> -> vector<24x32xf32>
    %97 = arith.addf %78, %96 : vector<24x32xf32>
    %98 = vector.extract_strided_slice %23 {offsets = [0, 24], sizes = [24, 8], strides = [1, 1]} : vector<24x32xf32> to vector<24x8xf32>
    %99 = vector.extract_strided_slice %30 {offsets = [0, 24], sizes = [24, 8], strides = [1, 1]} : vector<24x32xf32> to vector<24x8xf32>
    %cst_50 = arith.constant dense<0.000000e+00> : vector<24x24xf32>
    %100 = tpu.matmul %98, %99, %cst_50 {dimension_numbers = #tpu.dot_dimension_numbers<[1], [1], [0], [0], [0, 0, 1, 0], [], []>} : vector<24x8xf32>, vector<24x8xf32>, vector<24x24xf32> -> vector<24x24xf32>
    %101 = arith.addf %100, %14 : vector<24x24xf32>
    %cst_51 = arith.constant dense<0xFF800000> : vector<24xf32>
    %102 = vector.multi_reduction <maximumf>, %101, %cst_51 [1] : vector<24x24xf32> to vector<24xf32>
    %103 = vector.shape_cast %102 : vector<24xf32> to vector<24x1xf32>
    %104 = vector.broadcast %103 : vector<24x1xf32> to vector<24x24xf32>
    %105 = arith.subf %101, %104 : vector<24x24xf32>
    %106 = math.exp %105 : vector<24x24xf32>
    %cst_52 = arith.constant dense<0.000000e+00> : vector<24xf32>
    %107 = vector.multi_reduction <add>, %106, %cst_52 [1] : vector<24x24xf32> to vector<24xf32>
    %108 = vector.shape_cast %107 : vector<24xf32> to vector<24x1xf32>
    %109 = tpu.reciprocal %108 {approx = true} : vector<24x1xf32> -> vector<24x1xf32>
    %110 = vector.broadcast %109 : vector<24x1xf32> to vector<24x24xf32>
    %111 = arith.mulf %106, %110 : vector<24x24xf32>
    %112 = vector.extract_strided_slice %37 {offsets = [0, 24], sizes = [24, 8], strides = [1, 1]} : vector<24x32xf32> to vector<24x8xf32>
    %cst_53 = arith.constant dense<0.000000e+00> : vector<24x8xf32>
    %113 = tpu.matmul %111, %112, %cst_53 {dimension_numbers = #tpu.dot_dimension_numbers<[1], [0], [0], [1], [0, 0, 1, 1], [], []>} : vector<24x24xf32>, vector<24x8xf32>, vector<24x8xf32> -> vector<24x8xf32>
    %114 = vector.extract_strided_slice %39 {offsets = [24, 0], sizes = [8, 32], strides = [1, 1]} : vector<32x32xf32> to vector<8x32xf32>
    %cst_54 = arith.constant dense<0.000000e+00> : vector<24x32xf32>
    %115 = tpu.matmul %113, %114, %cst_54 {dimension_numbers = #tpu.dot_dimension_numbers<[1], [0], [0], [1], [0, 0, 1, 1], [], []>} : vector<24x8xf32>, vector<8x32xf32>, vector<24x32xf32> -> vector<24x32xf32>
    %116 = arith.addf %97, %115 : vector<24x32xf32>
    %c0_55 = arith.constant 0 : index
    %c0_56 = arith.constant 0 : index
    %c0_57 = arith.constant 0 : index
    %117 = vector.load %arg12[%c0_55, %c0_56, %c0_57] : memref<1x1x32xf32, #tpu.memory_space<vmem>>, vector<1x1x32xf32>
    %118 = vector.shape_cast %117 : vector<1x1x32xf32> to vector<1x32xf32>
    %119 = vector.broadcast %118 : vector<1x32xf32> to vector<24x32xf32>
    %120 = arith.addf %116, %119 : vector<24x32xf32>
    %121 = arith.addf %3, %120 : vector<24x32xf32>
    %c0_58 = arith.constant 0 : index
    %c0_59 = arith.constant 0 : index
    %c0_60 = arith.constant 0 : index
    %122 = vector.load %arg13[%c0_58, %c0_59, %c0_60] : memref<1x1x32xf32, #tpu.memory_space<vmem>>, vector<1x1x32xf32>
    %123 = vector.shape_cast %122 : vector<1x1x32xf32> to vector<1x32xf32>
    %c0_61 = arith.constant 0 : index
    %c0_62 = arith.constant 0 : index
    %c0_63 = arith.constant 0 : index
    %124 = vector.load %arg14[%c0_61, %c0_62, %c0_63] : memref<1x1x32xf32, #tpu.memory_space<vmem>>, vector<1x1x32xf32>
    %125 = vector.shape_cast %124 : vector<1x1x32xf32> to vector<1x32xf32>
    %cst_64 = arith.constant dense<0.000000e+00> : vector<24xf32>
    %126 = vector.multi_reduction <add>, %121, %cst_64 [1] : vector<24x32xf32> to vector<24xf32>
    %127 = vector.shape_cast %126 : vector<24xf32> to vector<24x1xf32>
    %cst_65 = arith.constant 3.200000e+01 : f32
    %128 = vector.broadcast %cst_65 : f32 to vector<24x1xf32>
    %129 = arith.divf %127, %128 : vector<24x1xf32>
    %130 = vector.broadcast %129 : vector<24x1xf32> to vector<24x32xf32>
    %131 = arith.subf %121, %130 : vector<24x32xf32>
    %132 = vector.broadcast %129 : vector<24x1xf32> to vector<24x32xf32>
    %133 = arith.subf %121, %132 : vector<24x32xf32>
    %134 = arith.mulf %131, %133 : vector<24x32xf32>
    %cst_66 = arith.constant dense<0.000000e+00> : vector<24xf32>
    %135 = vector.multi_reduction <add>, %134, %cst_66 [1] : vector<24x32xf32> to vector<24xf32>
    %136 = vector.shape_cast %135 : vector<24xf32> to vector<24x1xf32>
    %cst_67 = arith.constant 3.200000e+01 : f32
    %137 = vector.broadcast %cst_67 : f32 to vector<24x1xf32>
    %138 = arith.divf %136, %137 : vector<24x1xf32>
    %139 = vector.broadcast %129 : vector<24x1xf32> to vector<24x32xf32>
    %140 = arith.subf %121, %139 : vector<24x32xf32>
    %cst_68 = arith.constant 9.99999974E-6 : f32
    %141 = vector.broadcast %cst_68 : f32 to vector<24x1xf32>
    %142 = arith.addf %138, %141 : vector<24x1xf32>
    %143 = math.rsqrt %142 : vector<24x1xf32>
    %144 = vector.broadcast %143 : vector<24x1xf32> to vector<24x32xf32>
    %145 = arith.mulf %140, %144 : vector<24x32xf32>
    %146 = vector.broadcast %123 : vector<1x32xf32> to vector<24x32xf32>
    %147 = arith.mulf %145, %146 : vector<24x32xf32>
    %148 = vector.broadcast %125 : vector<1x32xf32> to vector<24x32xf32>
    %149 = arith.addf %147, %148 : vector<24x32xf32>
    %c0_69 = arith.constant 0 : index
    %c0_70 = arith.constant 0 : index
    %c0_71 = arith.constant 0 : index
    %150 = vector.load %arg15[%c0_69, %c0_70, %c0_71] : memref<1x32x64xf32, #tpu.memory_space<vmem>>, vector<1x32x64xf32>
    %151 = vector.shape_cast %150 : vector<1x32x64xf32> to vector<32x64xf32>
    %cst_72 = arith.constant dense<0.000000e+00> : vector<24x64xf32>
    %152 = tpu.matmul %149, %151, %cst_72 {dimension_numbers = #tpu.dot_dimension_numbers<[1], [0], [0], [1], [0, 0, 1, 1], [], []>} : vector<24x32xf32>, vector<32x64xf32>, vector<24x64xf32> -> vector<24x64xf32>
    %c0_73 = arith.constant 0 : index
    %c0_74 = arith.constant 0 : index
    %c0_75 = arith.constant 0 : index
    %153 = vector.load %arg16[%c0_73, %c0_74, %c0_75] : memref<1x1x64xf32, #tpu.memory_space<vmem>>, vector<1x1x64xf32>
    %154 = vector.shape_cast %153 : vector<1x1x64xf32> to vector<1x64xf32>
    %155 = vector.broadcast %154 : vector<1x64xf32> to vector<24x64xf32>
    %156 = arith.addf %152, %155 : vector<24x64xf32>
    %cst_76 = arith.constant 0.000000e+00 : f32
    %157 = vector.broadcast %cst_76 : f32 to vector<24x64xf32>
    %158 = arith.maximumf %156, %157 : vector<24x64xf32>
    %c0_77 = arith.constant 0 : index
    %c0_78 = arith.constant 0 : index
    %c0_79 = arith.constant 0 : index
    %159 = vector.load %arg17[%c0_77, %c0_78, %c0_79] : memref<1x64x32xf32, #tpu.memory_space<vmem>>, vector<1x64x32xf32>
    %160 = vector.shape_cast %159 : vector<1x64x32xf32> to vector<64x32xf32>
    %cst_80 = arith.constant dense<0.000000e+00> : vector<24x32xf32>
    %161 = tpu.matmul %158, %160, %cst_80 {dimension_numbers = #tpu.dot_dimension_numbers<[1], [0], [0], [1], [0, 0, 1, 1], [], []>} : vector<24x64xf32>, vector<64x32xf32>, vector<24x32xf32> -> vector<24x32xf32>
    %c0_81 = arith.constant 0 : index
    %c0_82 = arith.constant 0 : index
    %c0_83 = arith.constant 0 : index
    %162 = vector.load %arg18[%c0_81, %c0_82, %c0_83] : memref<1x1x32xf32, #tpu.memory_space<vmem>>, vector<1x1x32xf32>
    %163 = vector.shape_cast %162 : vector<1x1x32xf32> to vector<1x32xf32>
    %164 = vector.broadcast %163 : vector<1x32xf32> to vector<24x32xf32>
    %165 = arith.addf %161, %164 : vector<24x32xf32>
    %166 = arith.addf %149, %165 : vector<24x32xf32>
    %c0_84 = arith.constant 0 : index
    %c0_85 = arith.constant 0 : index
    %c0_86 = arith.constant 0 : index
    %167 = vector.load %arg19[%c0_84, %c0_85, %c0_86] : memref<1x1x32xf32, #tpu.memory_space<vmem>>, vector<1x1x32xf32>
    %168 = vector.shape_cast %167 : vector<1x1x32xf32> to vector<1x32xf32>
    %c0_87 = arith.constant 0 : index
    %c0_88 = arith.constant 0 : index
    %c0_89 = arith.constant 0 : index
    %169 = vector.load %arg20[%c0_87, %c0_88, %c0_89] : memref<1x1x32xf32, #tpu.memory_space<vmem>>, vector<1x1x32xf32>
    %170 = vector.shape_cast %169 : vector<1x1x32xf32> to vector<1x32xf32>
    %cst_90 = arith.constant dense<0.000000e+00> : vector<24xf32>
    %171 = vector.multi_reduction <add>, %166, %cst_90 [1] : vector<24x32xf32> to vector<24xf32>
    %172 = vector.shape_cast %171 : vector<24xf32> to vector<24x1xf32>
    %cst_91 = arith.constant 3.200000e+01 : f32
    %173 = vector.broadcast %cst_91 : f32 to vector<24x1xf32>
    %174 = arith.divf %172, %173 : vector<24x1xf32>
    %175 = vector.broadcast %174 : vector<24x1xf32> to vector<24x32xf32>
    %176 = arith.subf %166, %175 : vector<24x32xf32>
    %177 = vector.broadcast %174 : vector<24x1xf32> to vector<24x32xf32>
    %178 = arith.subf %166, %177 : vector<24x32xf32>
    %179 = arith.mulf %176, %178 : vector<24x32xf32>
    %cst_92 = arith.constant dense<0.000000e+00> : vector<24xf32>
    %180 = vector.multi_reduction <add>, %179, %cst_92 [1] : vector<24x32xf32> to vector<24xf32>
    %181 = vector.shape_cast %180 : vector<24xf32> to vector<24x1xf32>
    %cst_93 = arith.constant 3.200000e+01 : f32
    %182 = vector.broadcast %cst_93 : f32 to vector<24x1xf32>
    %183 = arith.divf %181, %182 : vector<24x1xf32>
    %184 = vector.broadcast %174 : vector<24x1xf32> to vector<24x32xf32>
    %185 = arith.subf %166, %184 : vector<24x32xf32>
    %cst_94 = arith.constant 9.99999974E-6 : f32
    %186 = vector.broadcast %cst_94 : f32 to vector<24x1xf32>
    %187 = arith.addf %183, %186 : vector<24x1xf32>
    %188 = math.rsqrt %187 : vector<24x1xf32>
    %189 = vector.broadcast %188 : vector<24x1xf32> to vector<24x32xf32>
    %190 = arith.mulf %185, %189 : vector<24x32xf32>
    %191 = vector.broadcast %168 : vector<1x32xf32> to vector<24x32xf32>
    %192 = arith.mulf %190, %191 : vector<24x32xf32>
    %193 = vector.broadcast %170 : vector<1x32xf32> to vector<24x32xf32>
    %194 = arith.addf %192, %193 : vector<24x32xf32>
    %c0_95 = arith.constant 0 : index
    %c0_96 = arith.constant 0 : index
    %195 = vector.load %arg22[%c0_95, %c0_96] : memref<24x32xf32, #tpu.memory_space<vmem>>, vector<24x32xf32>
    tpu.vector_store %arg22[%c0_95, %c0_96], %194 {strides = array<i32>} : memref<24x32xf32, #tpu.memory_space<vmem>>, vector<24x32xf32>,
    %c0_97 = arith.constant 0 : index
    %c0_98 = arith.constant 0 : index
    %196 = vector.load %arg21[%c0_97, %c0_98] : memref<24x32xf32, #tpu.memory_space<vmem>>, vector<24x32xf32>
    tpu.vector_store %arg21[%c0_97, %c0_98], %194 {strides = array<i32>} : memref<24x32xf32, #tpu.memory_space<vmem>>, vector<24x32xf32>,
    return
  }
  func.func @transform_0(%arg0: i32) -> (i32, i32) {
    %c0_i32 = arith.constant 0 : i32
    %c0_i32_0 = arith.constant 0 : i32
    %c0_i32_1 = arith.constant 0 : i32
    return %c0_i32, %c0_i32_0 : i32, i32
  }
  func.func @transform_1(%arg0: i32) -> (i32, i32) {
    %c0_i32 = arith.constant 0 : i32
    %c0_i32_0 = arith.constant 0 : i32
    %c0_i32_1 = arith.constant 0 : i32
    return %c0_i32, %c0_i32_0 : i32, i32
  }
  func.func @transform_2(%arg0: i32) -> (i32, i32) {
    %c0_i32 = arith.constant 0 : i32
    %c0_i32_0 = arith.constant 0 : i32
    %c0_i32_1 = arith.constant 0 : i32
    return %c0_i32, %c0_i32_0 : i32, i32
  }
  func.func @transform_3(%arg0: i32) -> (i32, i32) {
    %c0_i32 = arith.constant 0 : i32
    %c0_i32_0 = arith.constant 0 : i32
    %c0_i32_1 = arith.constant 0 : i32
    return %c0_i32, %c0_i32_0 : i32, i32
  }
  func.func @transform_4(%arg0: i32) -> (i32, i32, i32) {
    %c0_i32 = arith.constant 0 : i32
    %c0_i32_0 = arith.constant 0 : i32
    %c0_i32_1 = arith.constant 0 : i32
    return %arg0, %c0_i32, %c0_i32_0 : i32, i32, i32
  }
  func.func @transform_5(%arg0: i32) -> (i32, i32, i32) {
    %c0_i32 = arith.constant 0 : i32
    %c0_i32_0 = arith.constant 0 : i32
    %c0_i32_1 = arith.constant 0 : i32
    return %arg0, %c0_i32, %c0_i32_0 : i32, i32, i32
  }
  func.func @transform_6(%arg0: i32) -> (i32, i32, i32) {
    %c0_i32 = arith.constant 0 : i32
    %c0_i32_0 = arith.constant 0 : i32
    %c0_i32_1 = arith.constant 0 : i32
    return %arg0, %c0_i32, %c0_i32_0 : i32, i32, i32
  }
  func.func @transform_7(%arg0: i32) -> (i32, i32, i32) {
    %c0_i32 = arith.constant 0 : i32
    %c0_i32_0 = arith.constant 0 : i32
    %c0_i32_1 = arith.constant 0 : i32
    return %arg0, %c0_i32, %c0_i32_0 : i32, i32, i32
  }
  func.func @transform_8(%arg0: i32) -> (i32, i32, i32) {
    %c0_i32 = arith.constant 0 : i32
    %c0_i32_0 = arith.constant 0 : i32
    %c0_i32_1 = arith.constant 0 : i32
    return %arg0, %c0_i32, %c0_i32_0 : i32, i32, i32
  }
  func.func @transform_9(%arg0: i32) -> (i32, i32, i32) {
    %c0_i32 = arith.constant 0 : i32
    %c0_i32_0 = arith.constant 0 : i32
    %c0_i32_1 = arith.constant 0 : i32
    return %arg0, %c0_i32, %c0_i32_0 : i32, i32, i32
  }
  func.func @transform_10(%arg0: i32) -> (i32, i32, i32) {
    %c0_i32 = arith.constant 0 : i32
    %c0_i32_0 = arith.constant 0 : i32
    %c0_i32_1 = arith.constant 0 : i32
    return %arg0, %c0_i32, %c0_i32_0 : i32, i32, i32
  }
  func.func @transform_11(%arg0: i32) -> (i32, i32, i32) {
    %c0_i32 = arith.constant 0 : i32
    %c0_i32_0 = arith.constant 0 : i32
    %c0_i32_1 = arith.constant 0 : i32
    return %arg0, %c0_i32, %c0_i32_0 : i32, i32, i32
  }
  func.func @transform_12(%arg0: i32) -> (i32, i32, i32) {
    %c0_i32 = arith.constant 0 : i32
    %c0_i32_0 = arith.constant 0 : i32
    %c0_i32_1 = arith.constant 0 : i32
    return %arg0, %c0_i32, %c0_i32_0 : i32, i32, i32
  }
  func.func @transform_13(%arg0: i32) -> (i32, i32, i32) {
    %c0_i32 = arith.constant 0 : i32
    %c0_i32_0 = arith.constant 0 : i32
    %c0_i32_1 = arith.constant 0 : i32
    return %arg0, %c0_i32, %c0_i32_0 : i32, i32, i32
  }
  func.func @transform_14(%arg0: i32) -> (i32, i32, i32) {
    %c0_i32 = arith.constant 0 : i32
    %c0_i32_0 = arith.constant 0 : i32
    %c0_i32_1 = arith.constant 0 : i32
    return %arg0, %c0_i32, %c0_i32_0 : i32, i32, i32
  }
  func.func @transform_15(%arg0: i32) -> (i32, i32, i32) {
    %c0_i32 = arith.constant 0 : i32
    %c0_i32_0 = arith.constant 0 : i32
    %c0_i32_1 = arith.constant 0 : i32
    return %arg0, %c0_i32, %c0_i32_0 : i32, i32, i32
  }
  func.func @transform_16(%arg0: i32) -> (i32, i32, i32) {
    %c0_i32 = arith.constant 0 : i32
    %c0_i32_0 = arith.constant 0 : i32
    %c0_i32_1 = arith.constant 0 : i32
    return %arg0, %c0_i32, %c0_i32_0 : i32, i32, i32
  }
  func.func @transform_17(%arg0: i32) -> (i32, i32, i32) {
    %c0_i32 = arith.constant 0 : i32
    %c0_i32_0 = arith.constant 0 : i32
    %c0_i32_1 = arith.constant 0 : i32
    return %arg0, %c0_i32, %c0_i32_0 : i32, i32, i32
  }
  func.func @transform_18(%arg0: i32) -> (i32, i32, i32) {
    %c0_i32 = arith.constant 0 : i32
    %c0_i32_0 = arith.constant 0 : i32
    %c0_i32_1 = arith.constant 0 : i32
    return %arg0, %c0_i32, %c0_i32_0 : i32, i32, i32
  }
  func.func @transform_19(%arg0: i32) -> (i32, i32, i32) {
    %c0_i32 = arith.constant 0 : i32
    %c0_i32_0 = arith.constant 0 : i32
    %c0_i32_1 = arith.constant 0 : i32
    return %arg0, %c0_i32, %c0_i32_0 : i32, i32, i32
  }
  func.func @transform_20(%arg0: i32) -> (i32, i32) {
    %c0_i32 = arith.constant 0 : i32
    %c0_i32_0 = arith.constant 0 : i32
    %c0_i32_1 = arith.constant 0 : i32
    return %c0_i32, %c0_i32_0 : i32, i32
  }
}

module attributes {stable_mosaic.version = 11 : i64} {
  func.func @_post_vq_kernel(%arg0: i32, %arg1: memref<8x32xf32, #tpu.memory_space<vmem>>, %arg2: memref<1x32xf32, #tpu.memory_space<vmem>>, %arg3: memref<1x32xf32, #tpu.memory_space<vmem>>, %arg4: memref<32x128xf32, #tpu.memory_space<vmem>>, %arg5: memref<1x128xf32, #tpu.memory_space<vmem>>, %arg6: memref<8x128xf32, #tpu.memory_space<vmem>>, %arg7: memref<128x32xf32, #tpu.memory_space<vmem>>, %arg8: memref<1x32xf32, #tpu.memory_space<vmem>>, %arg9: memref<8x32xf32, #tpu.memory_space<vmem>>, %arg10: memref<8x1xi32, #tpu.memory_space<vmem>>, %arg11: memref<1x1xf32, #tpu.memory_space<vmem>>) attributes {dimension_semantics = [#tpu.dimension_semantics<arbitrary>], iteration_bounds = array<i64: 1>, scalar_prefetch = 0 : i64, scratch_operands = 0 : i64, tpu.core_type = #tpu.core_type<tc>, window_params = [{pipeline_mode = #tpu.pipeline_mode<synchronous>, transform_indices = @transform_0, window_bounds = array<i64: 8, 32>}, {pipeline_mode = #tpu.pipeline_mode<synchronous>, transform_indices = @transform_1, window_bounds = array<i64: 1, 32>}, {pipeline_mode = #tpu.pipeline_mode<synchronous>, transform_indices = @transform_2, window_bounds = array<i64: 1, 32>}, {pipeline_mode = #tpu.pipeline_mode<synchronous>, transform_indices = @transform_3, window_bounds = array<i64: 32, 128>}, {pipeline_mode = #tpu.pipeline_mode<synchronous>, transform_indices = @transform_4, window_bounds = array<i64: 1, 128>}, {pipeline_mode = #tpu.pipeline_mode<synchronous>, transform_indices = @transform_5, window_bounds = array<i64: 8, 128>}, {pipeline_mode = #tpu.pipeline_mode<synchronous>, transform_indices = @transform_6, window_bounds = array<i64: 128, 32>}, {pipeline_mode = #tpu.pipeline_mode<synchronous>, transform_indices = @transform_7, window_bounds = array<i64: 1, 32>}, {pipeline_mode = #tpu.pipeline_mode<synchronous>, transform_indices = @transform_8, window_bounds = array<i64: 8, 32>}, {pipeline_mode = #tpu.pipeline_mode<synchronous>, transform_indices = @transform_9, window_bounds = array<i64: 8, 1>}, {pipeline_mode = #tpu.pipeline_mode<synchronous>, transform_indices = @transform_10, window_bounds = array<i64: 1, 1>}]} {
    %c0 = arith.constant 0 : index
    %c0_0 = arith.constant 0 : index
    %0 = vector.load %arg1[%c0, %c0_0] : memref<8x32xf32, #tpu.memory_space<vmem>>, vector<8x32xf32>
    %c0_1 = arith.constant 0 : index
    %c0_2 = arith.constant 0 : index
    %1 = vector.load %arg2[%c0_1, %c0_2] : memref<1x32xf32, #tpu.memory_space<vmem>>, vector<1x32xf32>
    %c0_3 = arith.constant 0 : index
    %c0_4 = arith.constant 0 : index
    %2 = vector.load %arg3[%c0_3, %c0_4] : memref<1x32xf32, #tpu.memory_space<vmem>>, vector<1x32xf32>
    %cst = arith.constant dense<0.000000e+00> : vector<8xf32>
    %3 = vector.multi_reduction <add>, %0, %cst [1] : vector<8x32xf32> to vector<8xf32>
    %4 = vector.shape_cast %3 : vector<8xf32> to vector<8x1xf32>
    %cst_5 = arith.constant 3.200000e+01 : f32
    %5 = vector.broadcast %cst_5 : f32 to vector<8x1xf32>
    %6 = arith.divf %4, %5 : vector<8x1xf32>
    %7 = vector.broadcast %6 : vector<8x1xf32> to vector<8x32xf32>
    %8 = arith.subf %0, %7 : vector<8x32xf32>
    %9 = vector.broadcast %6 : vector<8x1xf32> to vector<8x32xf32>
    %10 = arith.subf %0, %9 : vector<8x32xf32>
    %11 = arith.mulf %8, %10 : vector<8x32xf32>
    %cst_6 = arith.constant dense<0.000000e+00> : vector<8xf32>
    %12 = vector.multi_reduction <add>, %11, %cst_6 [1] : vector<8x32xf32> to vector<8xf32>
    %13 = vector.shape_cast %12 : vector<8xf32> to vector<8x1xf32>
    %cst_7 = arith.constant 3.200000e+01 : f32
    %14 = vector.broadcast %cst_7 : f32 to vector<8x1xf32>
    %15 = arith.divf %13, %14 : vector<8x1xf32>
    %16 = vector.broadcast %6 : vector<8x1xf32> to vector<8x32xf32>
    %17 = arith.subf %0, %16 : vector<8x32xf32>
    %cst_8 = arith.constant 9.99999974E-6 : f32
    %18 = vector.broadcast %cst_8 : f32 to vector<8x1xf32>
    %19 = arith.addf %15, %18 : vector<8x1xf32>
    %20 = math.rsqrt %19 : vector<8x1xf32>
    %21 = vector.broadcast %20 : vector<8x1xf32> to vector<8x32xf32>
    %22 = arith.mulf %17, %21 : vector<8x32xf32>
    %23 = vector.broadcast %1 : vector<1x32xf32> to vector<8x32xf32>
    %24 = arith.mulf %22, %23 : vector<8x32xf32>
    %25 = vector.broadcast %2 : vector<1x32xf32> to vector<8x32xf32>
    %26 = arith.addf %24, %25 : vector<8x32xf32>
    %c0_9 = arith.constant 0 : index
    %c0_10 = arith.constant 0 : index
    %27 = vector.load %arg4[%c0_9, %c0_10] : memref<32x128xf32, #tpu.memory_space<vmem>>, vector<32x128xf32>
    %cst_11 = arith.constant dense<0.000000e+00> : vector<8x128xf32>
    %28 = tpu.matmul %26, %27, %cst_11 {dimension_numbers = #tpu.dot_dimension_numbers<[1], [0], [0], [1], [0, 0, 1, 1], [], []>} : vector<8x32xf32>, vector<32x128xf32>, vector<8x128xf32> -> vector<8x128xf32>
    %c0_12 = arith.constant 0 : index
    %c0_13 = arith.constant 0 : index
    %29 = vector.load %arg5[%c0_12, %c0_13] : memref<1x128xf32, #tpu.memory_space<vmem>>, vector<1x128xf32>
    %30 = vector.broadcast %29 : vector<1x128xf32> to vector<8x128xf32>
    %31 = arith.addf %28, %30 : vector<8x128xf32>
    %c0_14 = arith.constant 0 : index
    %c0_15 = arith.constant 0 : index
    %32 = vector.load %arg6[%c0_14, %c0_15] : memref<8x128xf32, #tpu.memory_space<vmem>>, vector<8x128xf32>
    %33 = arith.mulf %31, %31 : vector<8x128xf32>
    %cst_16 = arith.constant dense<0.000000e+00> : vector<8xf32>
    %34 = vector.multi_reduction <add>, %33, %cst_16 [1] : vector<8x128xf32> to vector<8xf32>
    %35 = vector.shape_cast %34 : vector<8xf32> to vector<8x1xf32>
    %cst_17 = arith.constant 1.000000e+00 : f32
    %36 = vector.broadcast %cst_17 : f32 to vector<1x128xf32>
    %37 = arith.mulf %32, %32 : vector<8x128xf32>
    %cst_18 = arith.constant dense<0.000000e+00> : vector<1x8xf32>
    %38 = tpu.matmul %36, %37, %cst_18 {dimension_numbers = #tpu.dot_dimension_numbers<[1], [1], [0], [0], [0, 0, 1, 0], [], []>} : vector<1x128xf32>, vector<8x128xf32>, vector<1x8xf32> -> vector<1x8xf32>
    %cst_19 = arith.constant dense<0.000000e+00> : vector<8x8xf32>
    %39 = tpu.matmul %31, %32, %cst_19 {dimension_numbers = #tpu.dot_dimension_numbers<[1], [1], [0], [0], [0, 0, 1, 0], [], []>} : vector<8x128xf32>, vector<8x128xf32>, vector<8x8xf32> -> vector<8x8xf32>
    %cst_20 = arith.constant 2.000000e+00 : f32
    %40 = vector.broadcast %cst_20 : f32 to vector<8x8xf32>
    %41 = arith.mulf %40, %39 : vector<8x8xf32>
    %42 = vector.broadcast %35 : vector<8x1xf32> to vector<8x8xf32>
    %43 = arith.subf %42, %41 : vector<8x8xf32>
    %44 = vector.broadcast %38 : vector<1x8xf32> to vector<8x8xf32>
    %45 = arith.addf %43, %44 : vector<8x8xf32>
    %46 = tpu.iota {dimensions = array<i32: 1>} : vector<8x8xi32>
    %cst_21 = arith.constant dense<0x7F800000> : vector<8xf32>
    %47 = vector.multi_reduction <minimumf>, %45, %cst_21 [1] : vector<8x8xf32> to vector<8xf32>
    %48 = vector.shape_cast %47 : vector<8xf32> to vector<8x1xf32>
    %49 = vector.broadcast %48 : vector<8x1xf32> to vector<8x8xf32>
    %50 = arith.cmpf ole, %45, %49 : vector<8x8xf32>
    %c1073741824_i32 = arith.constant 1073741824 : i32
    %51 = vector.broadcast %c1073741824_i32 : i32 to vector<8x8xi32>
    %52 = arith.select %50, %46, %51 : vector<8x8xi1>, vector<8x8xi32>
    %cst_22 = arith.constant dense<2147483647> : vector<8xi32>
    %53 = vector.multi_reduction <minsi>, %52, %cst_22 [1] : vector<8x8xi32> to vector<8xi32>
    %54 = vector.shape_cast %53 : vector<8xi32> to vector<8x1xi32>
    %55 = vector.broadcast %54 : vector<8x1xi32> to vector<8x8xi32>
    %56 = arith.cmpi eq, %46, %55 : vector<8x8xi32>
    %57 = arith.extui %56 : vector<8x8xi1> to vector<8x8xi32>
    %58 = arith.sitofp %57 : vector<8x8xi32> to vector<8x8xf32>
    %cst_23 = arith.constant dense<0.000000e+00> : vector<8x128xf32>
    %59 = tpu.matmul %58, %32, %cst_23 {dimension_numbers = #tpu.dot_dimension_numbers<[1], [0], [0], [1], [0, 0, 1, 1], [], []>} : vector<8x8xf32>, vector<8x128xf32>, vector<8x128xf32> -> vector<8x128xf32>
    %60 = arith.subf %59, %31 : vector<8x128xf32>
    %61 = arith.mulf %60, %60 : vector<8x128xf32>
    %cst_24 = arith.constant dense<0.000000e+00> : vector<8xf32>
    %62 = vector.multi_reduction <add>, %61, %cst_24 [1] : vector<8x128xf32> to vector<8xf32>
    %63 = vector.shape_cast %62 : vector<8xf32> to vector<8x1xf32>
    %cst_25 = arith.constant dense<0.000000e+00> : vector<1xf32>
    %64 = vector.multi_reduction <add>, %63, %cst_25 [0] : vector<8x1xf32> to vector<1xf32>
    %65 = vector.shape_cast %64 : vector<1xf32> to vector<1x1xf32>
    %cst_26 = arith.constant 9.765625E-4 : f32
    %66 = vector.broadcast %cst_26 : f32 to vector<1x1xf32>
    %67 = arith.mulf %65, %66 : vector<1x1xf32>
    %c0_27 = arith.constant 0 : index
    %c0_28 = arith.constant 0 : index
    %68 = vector.load %arg11[%c0_27, %c0_28] : memref<1x1xf32, #tpu.memory_space<vmem>>, vector<1x1xf32>
    tpu.vector_store %arg11[%c0_27, %c0_28], %67 {strides = array<i32>} : memref<1x1xf32, #tpu.memory_space<vmem>>, vector<1x1xf32>,
    %c0_29 = arith.constant 0 : index
    %c0_30 = arith.constant 0 : index
    %69 = vector.load %arg10[%c0_29, %c0_30] : memref<8x1xi32, #tpu.memory_space<vmem>>, vector<8x1xi32>
    tpu.vector_store %arg10[%c0_29, %c0_30], %54 {strides = array<i32>} : memref<8x1xi32, #tpu.memory_space<vmem>>, vector<8x1xi32>,
    %c0_31 = arith.constant 0 : index
    %c0_32 = arith.constant 0 : index
    %70 = vector.load %arg7[%c0_31, %c0_32] : memref<128x32xf32, #tpu.memory_space<vmem>>, vector<128x32xf32>
    %cst_33 = arith.constant dense<0.000000e+00> : vector<8x32xf32>
    %71 = tpu.matmul %59, %70, %cst_33 {dimension_numbers = #tpu.dot_dimension_numbers<[1], [0], [0], [1], [0, 0, 1, 1], [], []>} : vector<8x128xf32>, vector<128x32xf32>, vector<8x32xf32> -> vector<8x32xf32>
    %c0_34 = arith.constant 0 : index
    %c0_35 = arith.constant 0 : index
    %72 = vector.load %arg8[%c0_34, %c0_35] : memref<1x32xf32, #tpu.memory_space<vmem>>, vector<1x32xf32>
    %73 = vector.broadcast %72 : vector<1x32xf32> to vector<8x32xf32>
    %74 = arith.addf %71, %73 : vector<8x32xf32>
    %c0_36 = arith.constant 0 : index
    %c0_37 = arith.constant 0 : index
    %75 = vector.load %arg9[%c0_36, %c0_37] : memref<8x32xf32, #tpu.memory_space<vmem>>, vector<8x32xf32>
    tpu.vector_store %arg9[%c0_36, %c0_37], %74 {strides = array<i32>} : memref<8x32xf32, #tpu.memory_space<vmem>>, vector<8x32xf32>,
    return
  }
  func.func @transform_0(%arg0: i32) -> (i32, i32) {
    %c0_i32 = arith.constant 0 : i32
    %c0_i32_0 = arith.constant 0 : i32
    %c0_i32_1 = arith.constant 0 : i32
    return %c0_i32, %c0_i32_0 : i32, i32
  }
  func.func @transform_1(%arg0: i32) -> (i32, i32) {
    %c0_i32 = arith.constant 0 : i32
    %c0_i32_0 = arith.constant 0 : i32
    %c0_i32_1 = arith.constant 0 : i32
    return %c0_i32, %c0_i32_0 : i32, i32
  }
  func.func @transform_2(%arg0: i32) -> (i32, i32) {
    %c0_i32 = arith.constant 0 : i32
    %c0_i32_0 = arith.constant 0 : i32
    %c0_i32_1 = arith.constant 0 : i32
    return %c0_i32, %c0_i32_0 : i32, i32
  }
  func.func @transform_3(%arg0: i32) -> (i32, i32) {
    %c0_i32 = arith.constant 0 : i32
    %c0_i32_0 = arith.constant 0 : i32
    %c0_i32_1 = arith.constant 0 : i32
    return %c0_i32, %c0_i32_0 : i32, i32
  }
  func.func @transform_4(%arg0: i32) -> (i32, i32) {
    %c0_i32 = arith.constant 0 : i32
    %c0_i32_0 = arith.constant 0 : i32
    %c0_i32_1 = arith.constant 0 : i32
    return %c0_i32, %c0_i32_0 : i32, i32
  }
  func.func @transform_5(%arg0: i32) -> (i32, i32) {
    %c0_i32 = arith.constant 0 : i32
    %c0_i32_0 = arith.constant 0 : i32
    %c0_i32_1 = arith.constant 0 : i32
    return %c0_i32, %c0_i32_0 : i32, i32
  }
  func.func @transform_6(%arg0: i32) -> (i32, i32) {
    %c0_i32 = arith.constant 0 : i32
    %c0_i32_0 = arith.constant 0 : i32
    %c0_i32_1 = arith.constant 0 : i32
    return %c0_i32, %c0_i32_0 : i32, i32
  }
  func.func @transform_7(%arg0: i32) -> (i32, i32) {
    %c0_i32 = arith.constant 0 : i32
    %c0_i32_0 = arith.constant 0 : i32
    %c0_i32_1 = arith.constant 0 : i32
    return %c0_i32, %c0_i32_0 : i32, i32
  }
  func.func @transform_8(%arg0: i32) -> (i32, i32) {
    %c0_i32 = arith.constant 0 : i32
    %c0_i32_0 = arith.constant 0 : i32
    %c0_i32_1 = arith.constant 0 : i32
    return %c0_i32, %c0_i32_0 : i32, i32
  }
  func.func @transform_9(%arg0: i32) -> (i32, i32) {
    %c0_i32 = arith.constant 0 : i32
    %c0_i32_0 = arith.constant 0 : i32
    %c0_i32_1 = arith.constant 0 : i32
    return %c0_i32, %c0_i32_0 : i32, i32
  }
  func.func @transform_10(%arg0: i32) -> (i32, i32) {
    %c0_i32 = arith.constant 0 : i32
    %c0_i32_0 = arith.constant 0 : i32
    %c0_i32_1 = arith.constant 0 : i32
    return %c0_i32, %c0_i32_0 : i32, i32
  }
}

</mosaic_0001>

<bundles_post_ra>
// kernel: _lambda_.3
= control target key start
LH: loop header
LB: loop body
LE: loop exit
PB: predicated region body
PF: predicated region fallthrough
CT: control target
= control target key end

     0   :  { %vm36_vm0 = vcmask 261120   ;;  %s483_s0 = inlined_call_operand.vmem [shape: f32[8,32], index: 0, kind: input, shape index: {}]   ;;  %s484_s1 = inlined_call_operand.vmem [shape: f32[1,32], index: 1, kind: input, shape index: {}]   ;;  %s485_s2 = inlined_call_operand.vmem [shape: f32[1,32], index: 2, kind: input, shape index: {}]   ;;  %s486_s3 = inlined_call_operand.vmem [shape: f32[32,128], index: 3, kind: input, shape index: {}]   ;;  %s487_s4 = inlined_call_operand.vmem [shape: f32[1,128], index: 4, kind: input, shape index: {}]   ;;  %s488_s5 = inlined_call_operand.vmem [shape: f32[8,128], index: 5, kind: input, shape index: {}]   ;;  %s489_s6 = inlined_call_operand.vmem [shape: f32[128,32], index: 6, kind: input, shape index: {}]   ;;  %s490_s7 = inlined_call_operand.vmem [shape: f32[1,32], index: 7, kind: input, shape index: {}]   ;;  %s491_s8 = inlined_call_operand.vmem [shape: f32[8,32], index: 8, kind: output, shape index: {0}]   ;;  %s492_s9 = inlined_call_operand.vmem [shape: s32[8,1], index: 9, kind: output, shape index: {1}]   ;;  %s493_s10 = inlined_call_operand.hbm [shape: f32[1,1], index: 10, kind: output, shape index: {2}]  }
   0x1   :  { %v33_v0 = vld [vmem:[%s483_s0] sm:$0xff] }
   0x2   :  { %v37_v1 = vsel %vm36_vm0, %v33_v0, 0.0 }
   0x3   :  { %38 = vadd.xlane.f32.xlu0 %v37_v1 }
   0x4   :  { %16 = vsyncpa [#allocation3], 0  ;;  %v324_v2 = vmov 32.0   ;;  %v77_v14 = vld [vmem:[%s486_s3 + $0x18] sm:$0xff]  ;;  %v76_v15 = vld [vmem:[%s486_s3 + $0x10] sm:$0xff]  ;;  %v325_v35 = vmov 1.0   ;;  %v154_v48 = vlaneseq }
   0x5   :  { %294 = vrcp.f32 %v324_v2  ;;  %97 = vmatpush.msra.mxu0 %v77_v14  ;;  %v75_v16 = vld [vmem:[%s486_s3 + $0x8] sm:$0xff]  ;;  %v74_v17 = vld [vmem:[%s486_s3] sm:$0xff]  ;;  %vm156_vm5 = vcmask 64512   ;;  %v233_v59 = vld [vmem:[%s489_s6 + $0x78] sm:$0xff]  ;;  %vm216_vm8 = vcmask 7168   ;;  %s327_s14 = smov [#allocation2]  }
   0x6   :  { %v290_v27 = vld [vmem:[%s484_s1] ss:$0 sm:$0xff]  ;;  %v155_v49 = vand.u32 127, %v154_v48  ;;  %v232_v60 = vld [vmem:[%s489_s6 + $0x70] sm:$0xff]  ;;  %238 = vmatpush.msra.mxu3 %v233_v59  ;;  %v231_v61 = vld [vmem:[%s489_s6 + $0x68] sm:$0xff]  ;;  %s270_s16 = sshll.u32 %s493_s10, 4  ;;  %s271_s16 = int_to_ptr.hbm [resolvable:$true] %s270_s16 }
   0x7   :  { %98 = vmatpush.msra.mxu0 %v76_v15  ;;  %v291_v30 = vld [vmem:[%s485_s2] ss:$0 sm:$0xff]  ;;  %v229_v63 = vld [vmem:[%s489_s6 + $0x58] sm:$0xff]  ;;  %v227_v1 = vld [vmem:[%s489_s6 + $0x48] sm:$0xff]  ;;  %v326_v15 = vmov 0.0   ;;  %vm214_vm10 = vcmask 0  }
   0x8   :  { %v105_v33 = vld [vmem:[%s488_s5] sm:$0xff]  ;;  %239 = vmatpush.msra.mxu3 %v232_v60 }
   0x9   :  { %99 = vmatpush.msra.mxu0 %v75_v16  ;;  %145 = vmatpush.xpose.msra.mxu2 %v105_v33  ;;  %v109_v34 = vmul.f32 %v105_v33, %v105_v33  ;;  %v292_v36 = vld [vmem:[%s487_s4] ss:$0 sm:$0xff] }
   0xa   :  { %v230_v62 = vld [vmem:[%s489_s6 + $0x60] sm:$0xff]  ;;  %240 = vmatpush.msra.mxu3 %v231_v61 }
   0xb   :  { %v295_v3 = vpop.eup %294  ;;  %100 = vmatpush.msra.mxu0 %v74_v17  ;;  %125 = vmatpush.xpose.msra.mxu1 %v109_v34  ;;  %v226_v2 = vld [vmem:[%s489_s6 + $0x40] sm:$0xff] }
   0xc   :  { %v41_v4 = vmul.f32 32.0, %v295_v3  ;;  %vm45_vm1 = vweird.f32 %v295_v3  ;;  %241 = vmatpush.msra.mxu3 %v230_v62  ;;  %v218_v17 = vld [vmem:[%s489_s6] sm:$0xff] }
   0xe   :  { %v42_v5 = vsub.f32 1.0, %v41_v4  ;;  %126 = vmatmul.f32.vlgmr.msra.gmra.mxu1 %v325_v35  ;;  %242 = vmatpush.msra.mxu3 %v229_v63  ;;  %v224_v4 = vld [vmem:[%s489_s6 + $0x30] sm:$0xff] }
   0xf   :  { %198 = vmatpush.msrb.mxu1 %v105_v33 }
  0x10   :  { %v43_v6 = vmul.f32 %v295_v3, %v42_v5  ;;  %v223_v5 = vld [vmem:[%s489_s6 + $0x28] sm:$0xff] }
  0x12   :  { %v44_v7 = vadd.f32 %v295_v3, %v43_v6  ;;  %v222_v6 = vld [vmem:[%s489_s6 + $0x20] sm:$0xff] }
  0x14   :  { %v46_v8 = vsel %vm45_vm1, %v295_v3, %v44_v7  ;;  %v225_v3 = vld [vmem:[%s489_s6 + $0x38] sm:$0xff] }
  0x76   :  { %v39_v9 = vpop.xlane.xlu0 %38 }
  0x77   :  { %v47_v10 = vmul.f32 %v46_v8, %v39_v9  ;;  %v220_v9 = vld [vmem:[%s489_s6 + $0x10] sm:$0xff] }
  0x79   :  { %v48_v11 = vsub.f32 %v33_v0, %v47_v10  ;;  %v228_v0 = vld [vmem:[%s489_s6 + $0x50] sm:$0xff] }
  0x7a   :  { %243 = vmatpush.msra.mxu3 %v228_v0 }
  0x7b   :  { %v49_v12 = vmul.f32 %v48_v11, %v48_v11 }
  0x7c   :  { %244 = vmatpush.msra.mxu3 %v227_v1 }
  0x7d   :  { %v50_v13 = vsel %vm36_vm0, %v49_v12, 0.0 }
  0x7e   :  { %51 = vadd.xlane.f32.xlu0 %v50_v13  ;;  %245 = vmatpush.msra.mxu3 %v226_v2  ;;  %v219_v13 = vld [vmem:[%s489_s6 + $0x8] sm:$0xff] }
  0x80   :  { %246 = vmatpush.msra.mxu3 %v225_v3 }
  0x82   :  { %247 = vmatpush.msra.mxu3 %v224_v4 }
  0x84   :  { %248 = vmatpush.msra.mxu3 %v223_v5 }
  0x86   :  { %249 = vmatpush.msra.mxu3 %v222_v6 }
  0x8b   :  { %v127_v40 = vpop.f32.mrf.mxu1 }
  0x8c   :  { %v152_v43 = vperm.slane %v127_v40, 0 }
  0xf1   :  { %v52_v18 = vpop.xlane.xlu0 %51 }
  0xf2   :  { %v53_v19 = vmul.f32 %v52_v18, %v46_v8  ;;  %v221_v8 = vld [vmem:[%s489_s6 + $0x18] sm:$0xff]  ;;  %s268_s6 = sshll.u32 %s327_s14, 4  ;;  %s269_s6 = int_to_ptr.vmem [resolvable:$true] %s268_s6 }
  0xf3   :  { %250 = vmatpush.msra.mxu3 %v221_v8 }
  0xf4   :  { %v54_v20 = vadd.f32 1e-05, %v53_v19 }
  0xf5   :  { %251 = vmatpush.msra.mxu3 %v220_v9 }
  0xf6   :  { %296 = vrsqrt.f32 %v54_v20  ;;  %vm61_vm3 = vweird.f32 %v54_v20 }
  0xf7   :  { %252 = vmatpush.msra.mxu3 %v219_v13 }
  0xf9   :  { %253 = vmatpush.msra.mxu3 %v218_v17 }
  0xfc   :  { %v297_v21 = vpop.eup %296 }
  0xfd   :  { %v56_v22 = vmul.f32 %v297_v21, %v54_v20  ;;  %vm62_vm2 = vweird.f32 %v297_v21 }
  0xfe   :  { %vm63_vm4 = vmor %vm61_vm3, %vm62_vm2 }
  0xff   :  { %v57_v23 = vmul.f32 %v297_v21, %v56_v22 }
 0x101   :  { %v58_v24 = vmul.f32 0.5, %v57_v23 }
 0x103   :  { %v59_v25 = vsub.f32 1.5, %v58_v24 }
 0x105   :  { %v60_v26 = vmul.f32 %v297_v21, %v59_v25 }
 0x107   :  { %v64_v28 = vsel %vm63_vm4, %v297_v21, %v60_v26 }
 0x108   :  { %v65_v29 = vmul.f32 %v64_v28, %v48_v11 }
 0x10a   :  { %v69_v31 = vmul.f32 %v290_v27, %v65_v29  ;;  %v293_v27 = vld [vmem:[%s490_s7] ss:$0 sm:$0xff] }
 0x10c   :  { %v73_v32 = vadd.f32 %v291_v30, %v69_v31 }
 0x10e   :  { %283 = vmatmul.msk.f32.vlgmr.msra.gmra.mxu0 %vm36_vm0, %v73_v32 }
 0x18b   :  { %v102_v37 = vpop.f32.mrf.mxu0 }
 0x18c   :  { %v413_v38 = vadd.f32 %v292_v36, %v102_v37 }
 0x18e   :  { %146 = vmatmul.f32.vlgmr.msra.gmra.mxu2 %v413_v38  ;;  %v106_v39 = vmul.f32 %v413_v38, %v413_v38 }
 0x190   :  { %107 = vadd.xlane.f32.xlu1 %v106_v39 }
 0x203   :  { %v108_v44 = vpop.xlane.xlu1 %107 }
 0x211   :  { %v147_v41 = vpop.f32.mrf.mxu2 }
 0x212   :  { %v150_v42 = vmul.f32 2.0, %v147_v41 }
 0x214   :  { %v151_v45 = vsub.f32 %v108_v44, %v150_v42 }
 0x216   :  { %v153_v46 = vadd.f32 %v152_v43, %v151_v45 }
 0x218   :  { %v157_v47 = vsel %vm156_vm5, %v153_v46, inf }
 0x219   :  { %158 = vmin.xlane.f32.xlu1 %v157_v47 }
 0x28c   :  { %v159_v50 = vpop.xlane.xlu1 %158 }
 0x28d   :  { %vm160_vm6 = vcmp.le.f32.partialorder %v153_v46, %v159_v50 }
 0x28e   :  { %v161_v51 = vsel %vm160_vm6, %v155_v49, 1073741824 }
 0x28f   :  { %v162_v52 = vsel %vm156_vm5, %v161_v51, 2147483647 }
 0x290   :  { %v164_v53 = vshra.s32 %v162_v52, 16  ;;  %v163_v55 = vand.u32 65535, %v162_v52 }
 0x292   :  { %v166_v54 = vcvt.s32.f32 %v164_v53  ;;  %v165_v57 = vcvt.s32.f32 %v163_v55 }
 0x294   :  { %167 = vmin.xlane.f32.xlu2 %v166_v54 }
 0x307   :  { %v168_v56 = vpop.xlane.xlu2 %167 }
 0x308   :  { %vm169_vm7 = vcmp.eq.f32.partialorder %v166_v54, %v168_v56  ;;  %v174_v7 = vcvt.f32.s32 %v168_v56 }
 0x309   :  { %v170_v58 = vsel %vm169_vm7, %v165_v57, inf }
 0x30a   :  { %171 = vmin.xlane.f32.xlu2 %v170_v58  ;;  %v175_v11 = vshll.u32 %v174_v7, 16 }
 0x37d   :  { %v172_v10 = vpop.xlane.xlu2 %171 }
 0x37e   :  { %v173_v12 = vcvt.f32.s32 %v172_v10 }
 0x380   :  { %v176_v14 = vadd.s32 %v175_v11, %v173_v12 }
 0x382   :  { %vm177_vm9 = vcmp.eq.s32.totalorder %v155_v49, %v176_v14  ;;  %217 = vst.msk [vmem:[%s492_s9] sm:$0xff] %vm216_vm8, %v176_v14 }
 0x383   :  { %v284_v16 = vsel %vm177_vm9, 1.0, %v326_v15 }
 0x384   :  { %285 = vmatmul.msk.f32.vlgmr.msrb.gmra.mxu1 %vm156_vm5, %v284_v16 }
 0x401   :  { %v200_v18 = vpop.f32.mrf.mxu1 }
 0x402   :  { %v203_v19 = vsub.f32 %v200_v18, %v413_v38  ;;  %254 = vmatmul.f32.vlgmr.msra.gmra.mxu3 %v200_v18 }
 0x404   :  { %v204_v20 = vmul.f32 %v203_v19, %v203_v19 }
 0x406   :  { %205 = vadd.xlane.f32.xlu0 %v204_v20 }
 0x479   :  { %v206_v21 = vpop.xlane.xlu0 %205 }
 0x47a   :  { %v207_v22 = vrot.slane %v206_v21, 4 }
 0x47c   :  { %v208_v23 = vadd.f32 %v207_v22, %v206_v21 }
 0x47e   :  { %v209_v24 = vrot.slane %v208_v23, 2 }
 0x480   :  { %v210_v25 = vadd.f32 %v209_v24, %v208_v23 }
 0x482   :  { %v211_v26 = vrot.slane %v210_v25, 1 }
 0x484   :  { %v212_v28 = vadd.f32 %v211_v26, %v210_v25 }
 0x485   :  { %v255_v29 = vpop.f32.mrf.mxu3 }
 0x486   :  { %v213_v30 = vmul.f32 0.0009765625, %v212_v28  ;;  %v256_v31 = vadd.f32 %v293_v27, %v255_v29 }
 0x488   :  { %258 = vst.msk [vmem:[%s491_s8] sm:$0xff] %vm36_vm0, %v256_v31 }
 0x489   :  { %215 = vst.msk [vmem:[#allocation2] sm:$0x1] %vm214_vm10, %v213_v30 }
 0x48a   :  { %273 = dma.vmem_to_hbm [thread:$0]  %s269_s6, 16, %s271_s16, [#allocation3]  }
 0x48b   :  { %322 = dma.done.wait [#allocation3], 16  }
 0x48c   :  { %323 = vsyncadd [#allocation3], 4294967280 }
 0x48d   :  { %282 = vsyncpa [#allocation3], 1 }

// kernel: _lambda_.2
= control target key start
LH: loop header
LB: loop body
LE: loop exit
PB: predicated region body
PF: predicated region fallthrough
CT: control target
= control target key end

     0   :  { %s2911_s0 = inlined_call_operand.vmem [shape: f32[24,32], index: 0, kind: input, shape index: {}]   ;;  %s2912_s1 = inlined_call_operand.vmem [shape: f32[1,24], index: 1, kind: input, shape index: {}]   ;;  %s2913_s2 = inlined_call_operand.vmem [shape: f32[24,1], index: 2, kind: input, shape index: {}]   ;;  %s2914_s3 = inlined_call_operand.vmem [shape: f32[1,24], index: 3, kind: input, shape index: {}]   ;;  %s2915_s4 = inlined_call_operand.vmem [shape: f32[2,32,32], index: 4, kind: input, shape index: {}]   ;;  %s2916_s5 = inlined_call_operand.vmem [shape: f32[2,1,32], index: 5, kind: input, shape index: {}]   ;;  %s2917_s6 = inlined_call_operand.vmem [shape: f32[2,32,32], index: 6, kind: input, shape index: {}]   ;;  %s2918_s7 = inlined_call_operand.vmem [shape: f32[2,1,32], index: 7, kind: input, shape index: {}]   ;;  %s2919_s8 = inlined_call_operand.vmem [shape: f32[2,32,32], index: 8, kind: input, shape index: {}]   ;;  %s2920_s9 = inlined_call_operand.vmem [shape: f32[2,1,32], index: 9, kind: input, shape index: {}]   ;;  %s2921_s10 = inlined_call_operand.vmem [shape: f32[2,32,32], index: 10, kind: input, shape index: {}]   ;;  %s2922_s11 = inlined_call_operand.vmem [shape: f32[2,1,32], index: 11, kind: input, shape index: {}]   ;;  %s2923_s12 = inlined_call_operand.vmem [shape: f32[2,1,32], index: 12, kind: input, shape index: {}]   ;;  %s2924_s13 = inlined_call_operand.vmem [shape: f32[2,1,32], index: 13, kind: input, shape index: {}]   ;;  %s2925_s14 = inlined_call_operand.vmem [shape: f32[2,32,64], index: 14, kind: input, shape index: {}]   ;;  %s2926_s15 = inlined_call_operand.vmem [shape: f32[2,1,64], index: 15, kind: input, shape index: {}]   ;;  %s2927_s16 = inlined_call_operand.vmem [shape: f32[2,64,32], index: 16, kind: input, shape index: {}]   ;;  %s2928_s17 = inlined_call_operand.vmem [shape: f32[2,1,32], index: 17, kind: input, shape index: {}]   ;;  %s2929_s18 = inlined_call_operand.vmem [shape: f32[2,1,32], index: 18, kind: input, shape index: {}]   ;;  %s2930_s19 = inlined_call_operand.vmem [shape: f32[2,1,32], index: 19, kind: input, shape index: {}]   ;;  %s2931_s20 = inlined_call_operand.vmem [shape: f32[24,32], index: 20, kind: output, shape index: {}]  }
   0x1   :  { %2937 = sst [smem:[#allocation5_spill]] %s2911_s0 }
   0x2   :  { %2938 = sst [smem:[#allocation6_spill]] %s2912_s1  ;;  %s2445_s1 = smov 0  }
   0x3   :  { %2939 = sst [smem:[#allocation7_spill]] %s2913_s2 }
   0x4   :  { %2940 = sst [smem:[#allocation8_spill]] %s2914_s3 }
   0x5   :  { %2941 = sst [smem:[#allocation9_spill]] %s2915_s4 }
   0x6   :  { %2942 = sst [smem:[#allocation10_spill]] %s2916_s5 }
   0x7   :  { %2943 = sst [smem:[#allocation11_spill]] %s2917_s6 }
   0x8   :  { %2944 = sst [smem:[#allocation12_spill]] %s2919_s8 }
   0x9   :  { %2945 = sst [smem:[#allocation13_spill]] %s2921_s10 }
   0xa   :  { %2946 = sst [smem:[#allocation14_spill]] %s2924_s13 }
   0xb   :  { %2947 = sst [smem:[#allocation15_spill]] %s2925_s14 }
   0xc   :  { %2948 = sst [smem:[#allocation16_spill]] %s2929_s18 }
   0xd   :  { %2949 = sst [smem:[#allocation17_spill]] %s2930_s19 }
   0xe   :  { %2950 = sst [smem:[#allocation18_spill]] %s2931_s20 }
   0xf LB: > { %2951 = sst [smem:[#allocation3_spill]] %s2332_s1  ;;  %s2125_s22 = sadd.s32 4294967295, %s2332_s1   ;;  %s2332_s1 = sphi %s2445_s1, %s30_s1  }
  0x10   : > { %p2128_p0 = scmp.ge.s32.totalorder %s2332_s1, 1  ;;  %p687_p1 = scmp.lt.s32.totalorder %s2332_s1, 3 }
  0x12   : > { %p688_p2 = pnand %p2128_p0, %p687_p1 }
  0x14   : > { %691 = sbr.rel (%p688_p2) target bundleno = 2271 (0x8df), region = 100 }
  0x19   : > { %p795_p3 = scmp.lt.s32.totalorder %s2125_s22, 1  ;;  %s2953_s28 = sld [smem:[#allocation9_spill]] }
  0x1a   : > { %s2954_s6 = sld [smem:[#allocation11_spill]]  ;;  %p2141_p4 = scmp.ne.s32.totalorder %s2125_s22, 0 }
  0x1b   : > { %s2453_s23 = scalar_select %p795_p3, %s2125_s22, 1 }
  0x1c   : > { %s2955_s8 = sld [smem:[#allocation12_spill]] }
  0x1d   : > { %s2207_s24 = sshll.u32 %s2453_s23, 5  ;;  %s2957_s10 = sld [smem:[#allocation13_spill]] }
  0x1e   : > { %s2959_s14 = sld [smem:[#allocation15_spill]]  ;;  %s848_s18 = scalar_lea.vmem %s2928_s17, %s2453_s23 }
  0x1f   : > { %s2463_s4 = scalar_lea.vmem %s2953_s28, %s2207_s24  ;;  %s2960_s20 = sld [smem:[#allocation16_spill]] }
  0x20   : > { %s2468_s0 = scalar_lea.vmem %s2954_s6, %s2207_s24  ;;  %s2962_s26 = sld [smem:[#allocation5_spill]] (!%p2141_p4) }
  0x22   : > { %s2477_s2 = scalar_lea.vmem %s2955_s8, %s2207_s24 }
  0x23   : > { %2956 = sst [smem:[#allocation4_spill]] %s2477_s2  ;;  %s2486_s5 = scalar_lea.vmem %s2957_s10, %s2207_s24 }
  0x24   : > { %s2503_s25 = scalar_lea.vmem %s2959_s14, %s2207_s24  ;;  %s2212_s10 = sshll.u32 %s2453_s23, 6 }
  0x25   : > { %s2513_s6 = scalar_lea.vmem %s2927_s16, %s2212_s10  ;;  %s851_s2 = scalar_lea.vmem %s2960_s20, %s2453_s23 }
  0x26   : > { %s2961_s14 = sld [smem:[#allocation17_spill]] }
  0x28   : > { %858 = sbr.rel (%p2141_p4) target bundleno = 49 (0x31), region = 104 }
  0x2c   : > { %s854_s13 = scalar_lea.vmem %s2961_s14, %s2453_s23 }
  0x2d   : > { %v859_v0 = vld [vmem:[%s2962_s26] sm:$0xff]  ;;  %vm862_vm0 = vcmask 261120   ;;  %v860_v1 = vld [vmem:[%s2962_s26 + $0x8] sm:$0xff]  ;;  %v861_v2 = vld [vmem:[%s2962_s26 + $0x10] sm:$0xff] }
  0x2e   : > { %863 = vst.msk [vmem:[#allocation2] sm:$0xff] %vm862_vm0, %v859_v0 }
  0x2f   : > { %864 = vst.msk [vmem:[#allocation2 + $0x8] sm:$0xff] %vm862_vm0, %v860_v1 }
  0x30   : > { %865 = vst.msk [vmem:[#allocation2 + $0x10] sm:$0xff] %vm862_vm0, %v861_v2 }
  0x31 PF: > { %v907_v3 = vld [vmem:[%s2463_s4 + $0x18] sm:$0xff]  ;;  %v906_v4 = vld [vmem:[%s2463_s4 + $0x10] sm:$0xff]  ;;  %v905_v5 = vld [vmem:[%s2463_s4 + $0x8] sm:$0xff]  ;;  %vm912_vm1 = vcmask 261120   ;;  %s2963_s20 = sld [smem:[#allocation7_spill]]  ;;  %v2334_v16 = vmov 0   ;;  %s2964_s3 = scalar_lea.vmem %s2918_s7, %s2453_s23 }
  0x32   : > { %2213 = vmatpush.msra.mxu1 %v907_v3  ;;  %934 = vmatpush.msra.mxu0 %v907_v3  ;;  %v904_v6 = vld [vmem:[%s2463_s4] sm:$0xff]  ;;  %v954_v8 = vld [vmem:[%s2468_s0 + $0x18] sm:$0xff]  ;;  %v953_v10 = vld [vmem:[%s2468_s0 + $0x10] sm:$0xff]  ;;  %vm1023_vm2 = vcmask 64512   ;;  %s2965_s10 = sld [smem:[#allocation10_spill]]  ;;  %vm1068_vm4 = vcmask 195584   ;;  %s2970_s28 = scalar_lea.vmem %s2920_s9, %s2453_s23 }
  0x33   : > { %2214 = vmatpush.msra.mxu2 %v907_v3  ;;  %v952_v12 = vld [vmem:[%s2468_s0 + $0x8] sm:$0xff]  ;;  %v951_v13 = vld [vmem:[%s2468_s0] sm:$0xff]  ;;  %2235 = vset.pattern.permute.xlu0 %v2334_v16  ;;  %s2967_s8 = sld [smem:[#allocation8_spill]]  ;;  %v2335_v38 = vmov -1e+09   ;;  %s2336_s21 = smov 120  }
  0x34   : > { %2215 = vmatpush.msra.mxu1 %v906_v4  ;;  %935 = vmatpush.msra.mxu0 %v906_v4  ;;  %v2253_v21 = vld [vmem:[%s2964_s3] ss:$0 sm:$0xff]  ;;  %s2968_s4 = sld [smem:[#allocation6_spill]]  ;;  %s2337_s19 = smov 104  }
  0x35   : > { %2216 = vmatpush.msra.mxu2 %v906_v4  ;;  %v2543_v9 = vld [vmem:[#allocation2] sm:$0xff]  ;;  %2236 = vset.pattern.permute.xlu1 %v2334_v16  ;;  %s2969_s0 = sld [smem:[#allocation4_spill]]  ;;  %s2338_s24 = smov 112  }
  0x36   : > { %v2540_v7 = vld [vmem:[#allocation2 + $0x8] sm:$0xff]  ;;  %2217 = vmatpush.msra.mxu1 %v905_v5  ;;  %936 = vmatpush.msra.mxu0 %v905_v5  ;;  %v2256_v16 = vld [vmem:[%s2970_s28] ss:$0 sm:$0xff]  ;;  %s2972_s1 = scalar_lea.vmem %s2923_s12, %s2453_s23  ;;  %s2973_s22 = sld [smem:[#allocation14_spill]] }
  0x37   : > { %2218 = vmatpush.msra.mxu2 %v905_v5  ;;  %v2550_v11 = vld [vmem:[#allocation2 + $0x10] sm:$0xff]  ;;  %v869_v15 = vld [vmem:[%s2963_s20] sm:$0xff]  ;;  %v870_v18 = vld [vmem:[%s2963_s20 + $0x8] sm:$0xff] }
  0x38   : > { %2219 = vmatpush.msra.mxu1 %v904_v6  ;;  %937 = vmatpush.msra.mxu0 %v904_v6  ;;  %v871_v20 = vld [vmem:[%s2963_s20 + $0x10] sm:$0xff]  ;;  %s2966_s29 = scalar_lea.vmem %s2965_s10, %s2453_s23 }
  0x39   : > { %2143 = vmatmul.msk.f32.vlgmr.msra.gmra.mxu1 %vm912_vm1, %v2540_v7  ;;  %2142 = vmatmul.msk.f32.vlgmr.msra.gmra.mxu0 %vm912_vm1, %v2543_v9  ;;  %v2252_v25 = vld [vmem:[%s2966_s29] ss:$0 sm:$0xff] }
  0x3a   : > { %971 = vmatpush.msrb.mxu1 %v954_v8  ;;  %2220 = vmatpush.msra.mxu2 %v904_v6  ;;  %v2254_v35 = vld [vmem:[%s2967_s8] ss:$0 sm:$0xff] }
  0x3b   : > { %2144 = vmatmul.msk.f32.vlgmr.msra.gmra.mxu2 %vm912_vm1, %v2550_v11  ;;  %875 = vperm.xlu0 %2235, %v869_v15   ;;  %v2255_v37 = vld [vmem:[%s2968_s4] ss:$0 sm:$0xff]  ;;  %v988_v56 = vld [vmem:[%s2969_s0 + $0x18] sm:$0xff]  ;;  %v987_v57 = vld [vmem:[%s2969_s0 + $0x10] sm:$0xff] }
  0x3c   : > { %972 = vmatpush.msrb.mxu1 %v953_v10  ;;  %885 = vperm.xlu1 %2236, %v871_v20   ;;  %v986_v58 = vld [vmem:[%s2969_s0 + $0x8] sm:$0xff]  ;;  %v985_v59 = vld [vmem:[%s2969_s0] sm:$0xff]  ;;  %s2974_s4 = scalar_lea.vmem %s2973_s22, %s2453_s23 }
  0x3d   : > { %1005 = vmatpush.msrb.mxu2 %v988_v56 }
  0x3e   : > { %973 = vmatpush.msrb.mxu1 %v952_v12 }
  0x3f   : > { %1006 = vmatpush.msrb.mxu2 %v987_v57 }
  0x40   : > { %974 = vmatpush.msrb.mxu1 %v951_v13 }
  0x41   : > { %2145 = vmatmul.msk.f32.vlgmr.msrb.gmra.mxu1 %vm912_vm1, %v2543_v9  ;;  %1007 = vmatpush.msrb.mxu2 %v986_v58 }
  0x43   : > { %880 = vperm.xlu0 %2235, %v870_v18   ;;  %1008 = vmatpush.msrb.mxu2 %v985_v59 }
  0x44   : > { %2148 = vmatmul.msk.f32.vlgmr.msrb.gmra.mxu2 %vm912_vm1, %v2543_v9 }
  0x49   : > { %2146 = vmatmul.msk.f32.gmra.mxu1 %vm912_vm1, %v2540_v7 }
  0x4c   : > { %2149 = vmatmul.msk.f32.gmra.mxu2 %vm912_vm1, %v2540_v7 }
  0x51   : > { %2147 = vmatmul.msk.f32.gmra.mxu1 %vm912_vm1, %v2550_v11 }
  0x54   : > { %2150 = vmatmul.msk.f32.gmra.mxu2 %vm912_vm1, %v2550_v11 }
  0xad   : > { %v876_v36 = vpop.permute.xlu0 %875 }
  0xae   : > { %vm891_vm3 = vcmp.eq.f32.partialorder %v876_v36, %v2254_v35  ;;  %v886_v46 = vpop.permute.xlu1 %885 }
  0xaf   : > { %v894_v39 = vsel %vm891_vm3, 0.0, %v2335_v38  ;;  %vm893_vm6 = vcmp.eq.f32.partialorder %v886_v46, %v2254_v35 }
  0xb0   : > { %v2611_v40 = vadd.f32 %v2255_v37, %v894_v39  ;;  %v896_v50 = vsel %vm893_vm6, 0.0, %v2335_v38 }
  0xb1   : > { %v2619_v52 = vadd.f32 %v2255_v37, %v896_v50 }
  0xb5   : > { %v881_v41 = vpop.permute.xlu0 %880 }
  0xb6   : > { %v942_v14 = vpop.f32.mrf.mxu1  ;;  %v939_v24 = vpop.f32.mrf.mxu0  ;;  %vm892_vm5 = vcmp.eq.f32.partialorder %v881_v41, %v2254_v35 }
  0xb7   : > { %v940_v27 = vadd.f32 %v2252_v25, %v939_v24  ;;  %v943_v30 = vadd.f32 %v2252_v25, %v942_v14  ;;  %v895_v45 = vsel %vm892_vm5, 0.0, %v2335_v38 }
  0xb8   : > { %v2615_v47 = vadd.f32 %v2255_v37, %v895_v45 }
  0xb9   : > { %v2591_v29 = vmul.f32 0.35355338, %v940_v27  ;;  %v2597_v32 = vmul.f32 0.35355338, %v943_v30 }
  0xbe   : > { %v976_v17 = vpop.f32.mrf.mxu1  ;;  %v945_v31 = vpop.f32.mrf.mxu2 }
  0xbf   : > { %v2589_v28 = vadd.f32 %v2253_v21, %v976_v17  ;;  %v946_v33 = vadd.f32 %v2252_v25, %v945_v31 }
  0xc1   : > { %v2601_v34 = vmul.f32 0.35355338, %v946_v33 }
  0xc6   : > { %v979_v19 = vpop.f32.mrf.mxu1 }
  0xc7   : > { %v2585_v26 = vadd.f32 %v2253_v21, %v979_v19  ;;  %v1010_v14 = vpop.f32.mrf.mxu2 }
  0xc8   : > { %v2673_v20 = vadd.f32 %v2256_v16, %v1010_v14 }
  0xce   : > { %v982_v22 = vpop.f32.mrf.mxu1 }
  0xcf   : > { %v2576_v23 = vadd.f32 %v2253_v21, %v982_v22  ;;  %v1013_v15 = vpop.f32.mrf.mxu2  ;;  %v1019_v21 = vld [vmem:[%s2486_s5] sm:$0xff] }
  0xd0   : > { %v1014_v18 = vadd.f32 %v2256_v16, %v1013_v15 }
  0xd1   : > { %2151 = vmatpush.xpose.msk.msra.mxu3 %vm1023_vm2, %v2576_v23 }
  0xd5   : > { %2152 = vmatpush.xpose.msk.msra.mxu3 %vm1023_vm2, %v2585_v26 }
  0xd7   : > { %v1016_v17 = vpop.f32.mrf.mxu2 }
  0xd8   : > { %v1017_v19 = vadd.f32 %v2256_v16, %v1016_v17 }
  0xd9   : > { %2153 = vmatpush.xpose.msk.msra.mxu3 %vm1023_vm2, %v2589_v28 }
  0xda   : > { %1124 = vmatpush.msrb.mxu0 %v1017_v19  ;;  %v2681_v25 = vpack.i.bf16 %v1014_v18, %v1017_v19 }
  0xdc   : > { %2154 = vmatmul.msk.f32.vlgmr.msra.gmra.mxu3 %vm1023_vm2, %v2591_v29  ;;  %1125 = vmatpush.msrb.mxu0 %v1014_v18 }
  0xde   : > { %1126 = vmatpush.msrb.mxu0 %v2673_v20 }
  0xe0   : > { %1326 = vmatpush.msra.mxu0 %v1019_v21 }
  0xe4   : > { %2155 = vmatmul.msk.f32.gmra.mxu3 %vm1023_vm2, %v2597_v32 }
  0xec   : > { %2156 = vmatmul.msk.f32.gmra.mxu3 %vm1023_vm2, %v2601_v34 }
 0x15f   : > { %v1059_v42 = vpop.f32.mrf.mxu3 }
 0x160   : > { %v1060_v43 = vadd.f32 %v1059_v42, %v2611_v40 }
 0x162   : > { %v1069_v44 = vsel %vm1068_vm4, %v1060_v43, -inf }
 0x163   : > { %1070 = vmax.xlane.f32.xlu1 %v1069_v44 }
 0x167   : > { %v1062_v48 = vpop.f32.mrf.mxu3 }
 0x168   : > { %v1063_v49 = vadd.f32 %v1062_v48, %v2615_v47 }
 0x16a   : > { %v1072_v51 = vsel %vm1068_vm4, %v1063_v49, -inf }
 0x16b   : > { %1073 = vmax.xlane.f32.xlu2 %v1072_v51 }
 0x16f   : > { %v1065_v53 = vpop.f32.mrf.mxu3 }
 0x170   : > { %v1066_v54 = vadd.f32 %v1065_v53, %v2619_v52 }
 0x172   : > { %v1075_v55 = vsel %vm1068_vm4, %v1066_v54, -inf }
 0x173   : > { %1076 = vmax.xlane.f32.xlu2 %v1075_v55 }
 0x17c   : > { %1145 = vrot.lane.b32.xlu1 %v2585_v26, %s2336_s21 }
 0x184   : > { %1141 = vrot.lane.b32.xlu1 %v2601_v34, %s2336_s21 }
 0x18c   : > { %1512 = vrot.lane.b32.xlu1 %v2576_v23, %s2337_s19 }
 0x194   : > { %1508 = vrot.lane.b32.xlu1 %v2589_v28, %s2337_s19 }
 0x19c   : > { %1341 = vrot.lane.b32.xlu1 %v2601_v34, %s2338_s24 }
 0x1d6   : > { %v1071_v60 = vpop.xlane.xlu1 %1070 }
 0x1d7   : > { %v1078_v61 = vsub.f32 %v1060_v43, %v1071_v60 }
 0x1d9   : > { %v1081_v62 = vmul.f32 1.442695, %v1078_v61 }
 0x1db   : > { %2264 = vpow2.f32 %v1081_v62 }
 0x1de   : > { %v1074_v63 = vpop.xlane.xlu2 %1073 }
 0x1df   : > { %v1079_v0 = vsub.f32 %v1063_v49, %v1074_v63 }
 0x1e1   : > { %v2265_v1 = vpop.eup %2264  ;;  %v1083_v2 = vmul.f32 1.442695, %v1079_v0 }
 0x1e2   : > { %v1087_v3 = vsel %vm1068_vm4, %v2265_v1, 0.0 }
 0x1e3   : > { %2266 = vpow2.f32 %v1083_v2  ;;  %1088 = vadd.xlane.f32.xlu0 %v1087_v3 }
 0x1e6   : > { %v1077_v4 = vpop.xlane.xlu2 %1076 }
 0x1e7   : > { %v1080_v5 = vsub.f32 %v1066_v54, %v1077_v4 }
 0x1e9   : > { %v2267_v6 = vpop.eup %2266  ;;  %v1085_v8 = vmul.f32 1.442695, %v1080_v5 }
 0x1ea   : > { %v1090_v10 = vsel %vm1068_vm4, %v2267_v6, 0.0 }
 0x1eb   : > { %2268 = vpow2.f32 %v1085_v8  ;;  %1091 = vadd.xlane.f32.xlu2 %v1090_v10 }
 0x1ee   : > { %v1146_v22 = vpop.permute.xlu1 %1145 }
 0x1f1   : > { %v2269_v12 = vpop.eup %2268 }
 0x1f2   : > { %v1093_v13 = vsel %vm1068_vm4, %v2269_v12, 0.0 }
 0x1f3   : > { %1094 = vadd.xlane.f32.xlu2 %v1093_v13 }
 0x1f7   : > { %1137 = vrot.lane.b32.xlu0 %v2591_v29, %s2336_s21 }
 0x1ff   : > { %1345 = vrot.lane.b32.xlu0 %v2585_v26, %s2338_s24 }
 0x207   : > { %1337 = vrot.lane.b32.xlu0 %v2591_v29, %s2338_s24 }
 0x20b   : > { %1147 = vrot.lane.b32.xlu2 %v2576_v23, %s2336_s21 }
 0x20f   : > { %1339 = vrot.lane.b32.xlu0 %v2597_v32, %s2338_s24 }
 0x213   : > { %1143 = vrot.lane.b32.xlu2 %v2589_v28, %s2336_s21 }
 0x217   : > { %1504 = vrot.lane.b32.xlu0 %v2597_v32, %s2337_s19 }
 0x21b   : > { %1139 = vrot.lane.b32.xlu2 %v2597_v32, %s2336_s21 }
 0x223   : > { %1347 = vrot.lane.b32.xlu2 %v2576_v23, %s2338_s24  ;;  %v1142_v23 = vpop.permute.xlu1 %1141 }
 0x22b   : > { %1343 = vrot.lane.b32.xlu2 %v2589_v28, %s2338_s24  ;;  %v1513_v30 = vpop.permute.xlu1 %1512 }
 0x233   : > { %1510 = vrot.lane.b32.xlu2 %v2585_v26, %s2337_s19  ;;  %v1509_v45 = vpop.permute.xlu1 %1508 }
 0x23b   : > { %1502 = vrot.lane.b32.xlu2 %v2591_v29, %s2337_s19  ;;  %v1342_v48 = vpop.permute.xlu1 %1341 }
 0x243   : > { %1506 = vrot.lane.b32.xlu2 %v2601_v34, %s2337_s19 }
 0x256   : > { %v1089_v24 = vpop.xlane.xlu0 %1088 }
 0x257   : > { %2270 = vrcp.f32 %v1089_v24 }
 0x25d   : > { %v2271_v26 = vpop.eup %2270 }
 0x25e   : > { %v1092_v27 = vpop.xlane.xlu2 %1091  ;;  %v1099_v28 = vmul.f32 %v2271_v26, %v2265_v1 }
 0x25f   : > { %2272 = vrcp.f32 %v1092_v27 }
 0x260   : > { %2157 = vmatmul.msk.f32.vlgmr.msrb.gmra.mxu0 %vm1068_vm4, %v1099_v28 }
 0x261   : > { %2187 = vmatpush.xpose.msk.msrb.mxu0 %vm1023_vm2, %v1513_v30 }
 0x265   : > { %v2273_v29 = vpop.eup %2272 }
 0x266   : > { %v1095_v31 = vpop.xlane.xlu2 %1094  ;;  %v1100_v32 = vmul.f32 %v2273_v29, %v2267_v6 }
 0x267   : > { %2274 = vrcp.f32 %v1095_v31 }
 0x268   : > { %2158 = vmatmul.msk.f32.gmra.mxu0 %vm1068_vm4, %v1100_v32 }
 0x269   : > { %v1138_v37 = vpop.permute.xlu0 %1137 }
 0x26d   : > { %v2275_v33 = vpop.eup %2274 }
 0x26e   : > { %v1148_v34 = vpop.permute.xlu2 %1147  ;;  %v1101_v35 = vmul.f32 %v2275_v33, %v2269_v12 }
 0x26f   : > { %2160 = vmatpush.xpose.msk.msra.mxu1 %vm1023_vm2, %v1148_v34 }
 0x270   : > { %2159 = vmatmul.msk.f32.gmra.mxu0 %vm1068_vm4, %v1101_v35 }
 0x271   : > { %v1346_v39 = vpop.permute.xlu0 %1345 }
 0x273   : > { %2161 = vmatpush.xpose.msk.msra.mxu1 %vm1023_vm2, %v1146_v22 }
 0x276   : > { %v1144_v36 = vpop.permute.xlu2 %1143 }
 0x277   : > { %2162 = vmatpush.xpose.msk.msra.mxu1 %vm1023_vm2, %v1144_v36 }
 0x279   : > { %v1338_v43 = vpop.permute.xlu0 %1337 }
 0x27a   : > { %2163 = vmatmul.msk.f32.vlgmr.msra.gmra.mxu1 %vm1023_vm2, %v1138_v37 }
 0x27e   : > { %v1140_v38 = vpop.permute.xlu2 %1139 }
 0x281   : > { %v1340_v46 = vpop.permute.xlu0 %1339 }
 0x282   : > { %2164 = vmatmul.msk.f32.gmra.mxu1 %vm1023_vm2, %v1140_v38 }
 0x286   : > { %v1348_v41 = vpop.permute.xlu2 %1347 }
 0x287   : > { %2175 = vmatpush.xpose.msk.msrb.mxu1 %vm1023_vm2, %v1348_v41 }
 0x289   : > { %v1505_v57 = vpop.permute.xlu0 %1504 }
 0x28a   : > { %2165 = vmatmul.msk.f32.gmra.mxu1 %vm1023_vm2, %v1142_v23 }
 0x28b   : > { %2176 = vmatpush.xpose.msk.msrb.mxu1 %vm1023_vm2, %v1346_v39 }
 0x28e   : > { %v1344_v42 = vpop.permute.xlu2 %1343 }
 0x28f   : > { %2177 = vmatpush.xpose.msk.msrb.mxu1 %vm1023_vm2, %v1344_v42 }
 0x292   : > { %2178 = vmatmul.msk.f32.vlgmr.msrb.gmra.mxu1 %vm1023_vm2, %v1338_v43 }
 0x296   : > { %v1511_v44 = vpop.permute.xlu2 %1510 }
 0x297   : > { %2188 = vmatpush.xpose.msk.msrb.mxu0 %vm1023_vm2, %v1511_v44 }
 0x29a   : > { %2179 = vmatmul.msk.f32.gmra.mxu1 %vm1023_vm2, %v1340_v46 }
 0x29b   : > { %2189 = vmatpush.xpose.msk.msrb.mxu0 %vm1023_vm2, %v1509_v45 }
 0x29e   : > { %v1503_v53 = vpop.permute.xlu2 %1502 }
 0x2a2   : > { %2180 = vmatmul.msk.f32.gmra.mxu1 %vm1023_vm2, %v1342_v48 }
 0x2a6   : > { %v1507_v61 = vpop.permute.xlu2 %1506 }
 0x2dd   : > { %v1128_v49 = vpop.f32.mrf.mxu0 }
 0x2de   : > { %2172 = vmatmul.msk.f32.vlgmr.msra.gmra.mxu0 %vm1023_vm2, %v1128_v49 }
 0x2e5   : > { %v1131_v50 = vpop.f32.mrf.mxu0 }
 0x2e6   : > { %2173 = vmatmul.msk.f32.gmra.mxu0 %vm1023_vm2, %v1131_v50 }
 0x2ed   : > { %v1134_v51 = vpop.f32.mrf.mxu0 }
 0x2ee   : > { %2174 = vmatmul.msk.f32.gmra.mxu0 %vm1023_vm2, %v1134_v51 }
 0x2f6   : > { %2190 = vmatmul.msk.f32.vlgmr.msrb.gmra.mxu0 %vm1023_vm2, %v1503_v53 }
 0x2f7   : > { %v1178_v54 = vpop.f32.mrf.mxu1 }
 0x2f8   : > { %v1179_v55 = vadd.f32 %v1178_v54, %v2611_v40 }
 0x2fa   : > { %v1187_v56 = vsel %vm1068_vm4, %v1179_v55, -inf }
 0x2fb   : > { %1188 = vmax.xlane.f32.xlu1 %v1187_v56 }
 0x2fe   : > { %2191 = vmatmul.msk.f32.gmra.mxu0 %vm1023_vm2, %v1505_v57 }
 0x2ff   : > { %v1181_v58 = vpop.f32.mrf.mxu1 }
 0x300   : > { %v1182_v59 = vadd.f32 %v1181_v58, %v2615_v47 }
 0x302   : > { %v1190_v60 = vsel %vm1068_vm4, %v1182_v59, -inf }
 0x303   : > { %1191 = vmax.xlane.f32.xlu0 %v1190_v60 }
 0x306   : > { %2192 = vmatmul.msk.f32.gmra.mxu0 %vm1023_vm2, %v1507_v61 }
 0x307   : > { %v1184_v62 = vpop.f32.mrf.mxu1 }
 0x308   : > { %v1185_v63 = vadd.f32 %v1184_v62, %v2619_v52 }
 0x30a   : > { %v1193_v0 = vsel %vm1068_vm4, %v1185_v63, -inf }
 0x30b   : > { %1194 = vmax.xlane.f32.xlu2 %v1193_v0 }
 0x30f   : > { %v1378_v1 = vpop.f32.mrf.mxu1 }
 0x310   : > { %v1379_v2 = vadd.f32 %v1378_v1, %v2611_v40 }
 0x312   : > { %v1387_v3 = vsel %vm1068_vm4, %v1379_v2, -inf }
 0x313   : > { %1388 = vmax.xlane.f32.xlu1 %v1387_v3 }
 0x317   : > { %v1381_v4 = vpop.f32.mrf.mxu1 }
 0x318   : > { %v1382_v5 = vadd.f32 %v1381_v4, %v2615_v47 }
 0x31a   : > { %v1390_v6 = vsel %vm1068_vm4, %v1382_v5, -inf }
 0x31b   : > { %1391 = vmax.xlane.f32.xlu0 %v1390_v6 }
 0x31f   : > { %v1384_v8 = vpop.f32.mrf.mxu1 }
 0x320   : > { %v2722_v10 = vadd.f32 %v1384_v8, %v2619_v52 }
 0x322   : > { %v1393_v12 = vsel %vm1068_vm4, %v2722_v10, -inf }
 0x32c   : > { %1223 = vrot.lane.b32.xlu1 %v2673_v20, %s2336_s21 }
 0x32f   : > { %2238 = vrot.lane.b32.xlu0 %v2681_v25, %s2336_s21 }
 0x356   : > { %1394 = vmax.xlane.f32.xlu1 %v1393_v12 }
 0x35b   : > { %v2726_v13 = vpop.f32.mrf.mxu0 }
 0x363   : > { %v2728_v14 = vpop.f32.mrf.mxu0 }
 0x36b   : > { %v2730_v15 = vpop.f32.mrf.mxu0 }
 0x36e   : > { %v1189_v16 = vpop.xlane.xlu1 %1188 }
 0x36f   : > { %v1196_v17 = vsub.f32 %v1179_v55, %v1189_v16 }
 0x371   : > { %v1199_v18 = vmul.f32 1.442695, %v1196_v17 }
 0x373   : > { %2276 = vpow2.f32 %v1199_v18  ;;  %v1543_v19 = vpop.f32.mrf.mxu0 }
 0x374   : > { %v1544_v45 = vadd.f32 %v1543_v19, %v2611_v40 }
 0x376   : > { %v1192_v21 = vpop.xlane.xlu0 %1191  ;;  %v1552_v46 = vsel %vm1068_vm4, %v1544_v45, -inf }
 0x377   : > { %v1197_v22 = vsub.f32 %v1182_v59, %v1192_v21 }
 0x379   : > { %v2732_v23 = vpop.eup %2276  ;;  %v1201_v24 = vmul.f32 1.442695, %v1197_v22 }
 0x37a   : > { %v1205_v26 = vsel %vm1068_vm4, %v2732_v23, 0.0 }
 0x37b   : > { %2278 = vpow2.f32 %v1201_v24  ;;  %v1546_v27 = vpop.f32.mrf.mxu0  ;;  %1206 = vadd.xlane.f32.xlu1 %v1205_v26 }
 0x37c   : > { %v1547_v28 = vadd.f32 %v1546_v27, %v2615_v47 }
 0x37e   : > { %v1195_v30 = vpop.xlane.xlu2 %1194  ;;  %v1555_v29 = vsel %vm1068_vm4, %v1547_v28, -inf }
 0x37f   : > { %v1198_v31 = vsub.f32 %v1185_v63, %v1195_v30  ;;  %1556 = vmax.xlane.f32.xlu0 %v1555_v29 }
 0x381   : > { %v2738_v32 = vpop.eup %2278  ;;  %v1203_v33 = vmul.f32 1.442695, %v1198_v31 }
 0x382   : > { %v1208_v34 = vsel %vm1068_vm4, %v2738_v32, 0.0 }
 0x383   : > { %2280 = vpow2.f32 %v1203_v33  ;;  %1209 = vadd.xlane.f32.xlu2 %v1208_v34  ;;  %v1549_v53 = vpop.f32.mrf.mxu0 }
 0x384   : > { %v1550_v55 = vadd.f32 %v1549_v53, %v2619_v52 }
 0x386   : > { %v1389_v35 = vpop.xlane.xlu1 %1388  ;;  %v1558_v40 = vsel %vm1068_vm4, %v1550_v55, -inf }
 0x387   : > { %v1396_v36 = vsub.f32 %v1379_v2, %v1389_v35 }
 0x389   : > { %v2281_v37 = vpop.eup %2280  ;;  %v1399_v38 = vmul.f32 1.442695, %v1396_v36 }
 0x38a   : > { %v1211_v39 = vsel %vm1068_vm4, %v2281_v37, 0.0 }
 0x38b   : > { %2282 = vpow2.f32 %v1399_v38  ;;  %1212 = vadd.xlane.f32.xlu2 %v1211_v39 }
 0x38e   : > { %v1392_v47 = vpop.xlane.xlu0 %1391 }
 0x38f   : > { %v1397_v42 = vsub.f32 %v1382_v5, %v1392_v47 }
 0x391   : > { %v2743_v41 = vpop.eup %2282  ;;  %v1401_v44 = vmul.f32 1.442695, %v1397_v42 }
 0x392   : > { %v1405_v43 = vsel %vm1068_vm4, %v2743_v41, 0.0 }
 0x393   : > { %2243 = vrot.lane.b32.xlu0 %v2681_v25, %s2338_s24  ;;  %1406 = vadd.xlane.f32.xlu2 %v1405_v43  ;;  %2284 = vpow2.f32 %v1401_v44  ;;  %v1020_v44 = vld [vmem:[%s2486_s5 + $0x8] sm:$0xff] }
 0x394   : > { %1420 = vrot.lane.b32.xlu1 %v2673_v20, %s2338_s24  ;;  %1291 = vmatpush.msrb.mxu3 %v1020_v44 }
 0x399   : > { %v2753_v48 = vpop.eup %2284 }
 0x39a   : > { %v1408_v51 = vsel %vm1068_vm4, %v2753_v48, 0.0 }
 0x39b   : > { %1553 = vmax.xlane.f32.xlu2 %v1552_v46 }
 0x39e   : > { %v1224_v56 = vpop.permute.xlu1 %1223 }
 0x3a1   : > { %v2239_v49 = vpop.permute.xlu0 %2238 }
 0x3a2   : > { %v2240_v50 = vunpack.i.l.bf16 %v2239_v49  ;;  %v2241_v54 = vunpack.i.h.bf16 %v2239_v49 }
 0x3a3   : > { %1409 = vadd.xlane.f32.xlu2 %v1408_v51 }
 0x3a4   : > { %1254 = vmatpush.msra.mxu2 %v2240_v50 }
 0x3a6   : > { %1255 = vmatpush.msra.mxu2 %v2241_v54 }
 0x3a8   : > { %1256 = vmatpush.msra.mxu2 %v1224_v56 }
 0x3ab   : > { %1559 = vmax.xlane.f32.xlu2 %v1558_v40 }
 0x3c3   : > { %2248 = vrot.lane.b32.xlu2 %v2681_v25, %s2337_s19 }
 0x3c9   : > { %v1395_v57 = vpop.xlane.xlu1 %1394 }
 0x3ca   : > { %v1398_v58 = vsub.f32 %v2722_v10, %v1395_v57 }
 0x3cc   : > { %v1403_v59 = vmul.f32 1.442695, %v1398_v58 }
 0x3ce   : > { %2286 = vpow2.f32 %v1403_v59 }
 0x3d4   : > { %v2762_v60 = vpop.eup %2286 }
 0x3d5   : > { %v1411_v61 = vsel %vm1068_vm4, %v2762_v60, 0.0 }
 0x3d6   : > { %1412 = vadd.xlane.f32.xlu1 %v1411_v61 }
 0x3ee   : > { %v1207_v52 = vpop.xlane.xlu1 %1206 }
 0x3ef   : > { %2288 = vrcp.f32 %v1207_v52  ;;  %v1022_v52 = vld [vmem:[%s2486_s5 + $0x18] sm:$0xff] }
 0x3f2   : > { %v1557_v62 = vpop.xlane.xlu0 %1556 }
 0x3f3   : > { %v1562_v63 = vsub.f32 %v1547_v28, %v1557_v62 }
 0x3f5   : > { %v2289_v0 = vpop.eup %2288  ;;  %v1566_v1 = vmul.f32 1.442695, %v1562_v63 }
 0x3f6   : > { %v1217_v2 = vmul.f32 %v2289_v0, %v2732_v23  ;;  %v1210_v25 = vpop.xlane.xlu2 %1209 }
 0x3f7   : > { %2290 = vpow2.f32 %v1566_v1 }
 0x3f8   : > { %2292 = vrcp.f32 %v1210_v25  ;;  %2166 = vmatmul.msk.f32.vlgmr.msra.gmra.mxu2 %vm1068_vm4, %v1217_v2 }
 0x3fd   : > { %v2768_v3 = vpop.eup %2290 }
 0x3fe   : > { %v2293_v4 = vpop.eup %2292  ;;  %v1213_v5 = vpop.xlane.xlu2 %1212  ;;  %v1573_v6 = vsel %vm1068_vm4, %v2768_v3, 0.0 }
 0x3ff   : > { %2294 = vrcp.f32 %v1213_v5  ;;  %1574 = vadd.xlane.f32.xlu2 %v1573_v6  ;;  %v1218_v8 = vmul.f32 %v2293_v4, %v2738_v32 }
 0x401   : > { %2167 = vmatmul.msk.f32.gmra.mxu2 %vm1068_vm4, %v1218_v8 }
 0x405   : > { %v2295_v10 = vpop.eup %2294  ;;  %v2244_v12 = vpop.permute.xlu0 %2243 }
 0x406   : > { %v2245_v16 = vunpack.i.l.bf16 %v2244_v12  ;;  %v1407_v17 = vpop.xlane.xlu2 %1406  ;;  %v1219_v18 = vmul.f32 %v2295_v10, %v2281_v37  ;;  %v2246_v19 = vunpack.i.h.bf16 %v2244_v12  ;;  %v1421_v21 = vpop.permute.xlu1 %1420 }
 0x407   : > { %2296 = vrcp.f32 %v1407_v17 }
 0x408   : > { %1451 = vmatpush.msrb.mxu2 %v2245_v16 }
 0x409   : > { %2168 = vmatmul.msk.f32.gmra.mxu2 %vm1068_vm4, %v1219_v18 }
 0x40a   : > { %1452 = vmatpush.msrb.mxu2 %v2246_v19 }
 0x40c   : > { %1453 = vmatpush.msrb.mxu2 %v1421_v21 }
 0x40d   : > { %v2297_v22 = vpop.eup %2296 }
 0x40e   : > { %v1417_v23 = vmul.f32 %v2297_v22, %v2743_v41  ;;  %v1554_v24 = vpop.xlane.xlu2 %1553  ;;  %1653 = vmatpush.msra.mxu2 %v1022_v52 }
 0x40f   : > { %v1561_v26 = vsub.f32 %v1544_v45, %v1554_v24  ;;  %v1021_v45 = vld [vmem:[%s2486_s5 + $0x10] sm:$0xff]  ;;  %s2971_s5 = scalar_lea.vmem %s2922_s11, %s2453_s23 }
 0x410   : > { %1488 = vmatpush.msra.mxu3 %v1021_v45  ;;  %v2257_v6 = vld [vmem:[%s2971_s5] ss:$0 sm:$0xff] }
 0x411   : > { %v1564_v27 = vmul.f32 1.442695, %v1561_v26  ;;  %2181 = vmatmul.msk.f32.vlgmr.msrb.gmra.mxu2 %vm1068_vm4, %v1417_v23 }
 0x413   : > { %2298 = vpow2.f32 %v1564_v27 }
 0x416   : > { %v1410_v28 = vpop.xlane.xlu2 %1409 }
 0x417   : > { %2300 = vrcp.f32 %v1410_v28 }
 0x419   : > { %v2299_v30 = vpop.eup %2298 }
 0x41a   : > { %v1570_v29 = vsel %vm1068_vm4, %v2299_v30, 0.0 }
 0x41b   : > { %1571 = vadd.xlane.f32.xlu0 %v1570_v29 }
 0x41d   : > { %v2301_v31 = vpop.eup %2300 }
 0x41e   : > { %v1560_v32 = vpop.xlane.xlu2 %1559  ;;  %v1418_v33 = vmul.f32 %v2301_v31, %v2753_v48 }
 0x41f   : > { %v1563_v34 = vsub.f32 %v1550_v55, %v1560_v32 }
 0x420   : > { %2182 = vmatmul.msk.f32.gmra.mxu2 %vm1068_vm4, %v1418_v33  ;;  %v2339_v33 = vmov 32.0  }
 0x421   : > { %v1568_v35 = vmul.f32 1.442695, %v1563_v34 }
 0x423   : > { %2302 = vpow2.f32 %v1568_v35 }
 0x426   : > { %v2249_v36 = vpop.permute.xlu2 %2248 }
 0x427   : > { %v2250_v37 = vunpack.i.l.bf16 %v2249_v36  ;;  %v2251_v39 = vunpack.i.h.bf16 %v2249_v36 }
 0x429   : > { %v2303_v38 = vpop.eup %2302  ;;  %1616 = vmatpush.msra.mxu1 %v2250_v37 }
 0x42a   : > { %v1576_v47 = vsel %vm1068_vm4, %v2303_v38, 0.0 }
 0x42b   : > { %1617 = vmatpush.msra.mxu1 %v2251_v39  ;;  %1577 = vadd.xlane.f32.xlu1 %v1576_v47 }
 0x42f   : > { %1585 = vrot.lane.b32.xlu0 %v2673_v20, %s2337_s19  ;;  %s2975_s19 = scalar_lea.vmem %s2926_s15, %s2453_s23 }
 0x449   : > { %v1413_v41 = vpop.xlane.xlu1 %1412 }
 0x44a   : > { %2304 = vrcp.f32 %v1413_v41 }
 0x450   : > { %v2305_v42 = vpop.eup %2304 }
 0x451   : > { %v1419_v43 = vmul.f32 %v2305_v42, %v2762_v60 }
 0x453   : > { %2183 = vmatmul.msk.f32.gmra.mxu2 %vm1068_vm4, %v1419_v43 }
 0x472   : > { %v1575_v51 = vpop.xlane.xlu2 %1574 }
 0x47b   : > { %v1258_v46 = vpop.f32.mrf.mxu2 }
 0x47c   : > { %2169 = vmatmul.msk.f32.vlgmr.msrb.gmra.mxu3 %vm1023_vm2, %v1258_v46 }
 0x484   : > { %v1261_v48 = vpop.f32.mrf.mxu2 }
 0x485   : > { %2170 = vmatmul.msk.f32.gmra.mxu3 %vm1023_vm2, %v1261_v48 }
 0x48c   : > { %v1264_v49 = vpop.f32.mrf.mxu2 }
 0x48d   : > { %2171 = vmatmul.msk.f32.gmra.mxu3 %vm1023_vm2, %v1264_v49 }
 0x48e   : > { %v1572_v50 = vpop.xlane.xlu0 %1571 }
 0x48f   : > { %2306 = vrcp.f32 %v1572_v50 }
 0x490   : > { %2308 = vrcp.f32 %v1575_v51 }
 0x494   : > { %v1455_v20 = vpop.f32.mrf.mxu2 }
 0x495   : > { %2184 = vmatmul.msk.f32.vlgmr.msra.gmra.mxu3 %vm1023_vm2, %v1455_v20  ;;  %v2307_v53 = vpop.eup %2306 }
 0x496   : > { %v1582_v54 = vmul.f32 %v2307_v53, %v2299_v30  ;;  %v2309_v57 = vpop.eup %2308  ;;  %v1767_v53 = vld [vmem:[%s2503_s25 + $0x18] sm:$0xff] }
 0x497   : > { %v1583_v58 = vmul.f32 %v2309_v57, %v2768_v3  ;;  %1793 = vmatpush.msrb.mxu3 %v1767_v53  ;;  %v2261_v53 = vld [vmem:[%s848_s18] ss:$0 sm:$0xff] }
 0x49e   : > { %v1578_v40 = vpop.xlane.xlu1 %1577 }
 0x49f   : > { %2310 = vrcp.f32 %v1578_v40 }
 0x4a0   : > { %2312 = vrcp.f32 %v2339_v33 }
 0x4a1   : > { %v1586_v55 = vpop.permute.xlu0 %1585 }
 0x4a2   : > { %1618 = vmatpush.msra.mxu1 %v1586_v55  ;;  %v1765_v55 = vld [vmem:[%s2503_s25 + $0x8] sm:$0xff] }
 0x4a3   : > { %v1458_v56 = vpop.f32.mrf.mxu2  ;;  %2193 = vmatmul.msk.f32.vlgmr.msra.gmra.mxu1 %vm1068_vm4, %v1582_v54  ;;  %v1766_v54 = vld [vmem:[%s2503_s25 + $0x10] sm:$0xff] }
 0x4a4   : > { %2185 = vmatmul.msk.f32.gmra.mxu3 %vm1023_vm2, %v1458_v56  ;;  %v1764_v56 = vld [vmem:[%s2503_s25] sm:$0xff]  ;;  %s2978_s25 = sld [smem:[#allocation18_spill]] }
 0x4a5   : > { %v2311_v59 = vpop.eup %2310  ;;  %1794 = vmatpush.msrb.mxu3 %v1766_v54 }
 0x4a6   : > { %v1584_v60 = vmul.f32 %v2311_v59, %v2303_v38  ;;  %v2313_v34 = vpop.eup %2312 }
 0x4a7   : > { %v1689_v35 = vmul.f32 32.0, %v2313_v34  ;;  %vm1693_vm7 = vweird.f32 %v2313_v34  ;;  %1795 = vmatpush.msrb.mxu3 %v1765_v55 }
 0x4a9   : > { %v1690_v36 = vsub.f32 1.0, %v1689_v35  ;;  %1796 = vmatpush.msrb.mxu3 %v1764_v56 }
 0x4ab   : > { %2194 = vmatmul.msk.f32.gmra.mxu1 %vm1068_vm4, %v1583_v58 }
 0x4b3   : > { %2195 = vmatmul.msk.f32.gmra.mxu1 %vm1068_vm4, %v1584_v60 }
 0x4d6   : > { %v1461_v61 = vpop.f32.mrf.mxu2 }
 0x4d7   : > { %2186 = vmatmul.msk.f32.gmra.mxu3 %vm1023_vm2, %v1461_v61 }
 0x4ff   : > { %v1293_v1 = vpop.f32.mrf.mxu3 }
 0x500   : > { %v1329_v4 = vadd.f32 %v2726_v13, %v1293_v1 }
 0x508   : > { %v1296_v2 = vpop.f32.mrf.mxu3 }
 0x509   : > { %v1332_v17 = vadd.f32 %v2728_v14, %v1296_v2  ;;  %v1815_v2 = vld [vmem:[%s2513_s6 + $0x28] sm:$0xff] }
 0x510   : > { %v1299_v25 = vpop.f32.mrf.mxu3 }
 0x511   : > { %v1335_v26 = vadd.f32 %v2730_v15, %v1299_v25  ;;  %v1691_v15 = vmul.f32 %v2313_v34, %v1690_v36 }
 0x513   : > { %v1692_v37 = vadd.f32 %v2313_v34, %v1691_v15 }
 0x518   : > { %v1490_v3 = vpop.f32.mrf.mxu3 }
 0x519   : > { %v1499_v5 = vadd.f32 %v1490_v3, %v1329_v4 }
 0x520   : > { %v1620_v62 = vpop.f32.mrf.mxu1 }
 0x521   : > { %2196 = vmatmul.msk.f32.vlgmr.msra.gmra.mxu2 %vm1023_vm2, %v1620_v62 }
 0x527   : > { %v1493_v16 = vpop.f32.mrf.mxu3 }
 0x528   : > { %v1623_v63 = vpop.f32.mrf.mxu1  ;;  %v1500_v19 = vadd.f32 %v1493_v16, %v1332_v17 }
 0x529   : > { %2197 = vmatmul.msk.f32.gmra.mxu2 %vm1023_vm2, %v1623_v63  ;;  %v1817_v63 = vld [vmem:[%s2513_s6 + $0x38] sm:$0xff] }
 0x52a   : > { %1840 = vmatpush.msra.mxu0 %v1817_v63 }
 0x530   : > { %v1626_v0 = vpop.f32.mrf.mxu1 }
 0x531   : > { %2198 = vmatmul.msk.f32.gmra.mxu2 %vm1023_vm2, %v1626_v0  ;;  %v1816_v0 = vld [vmem:[%s2513_s6 + $0x30] sm:$0xff]  ;;  %vm1822_vm2 = vcmask 523264  }
 0x532   : > { %1841 = vmatpush.msra.mxu0 %v1816_v0 }
 0x534   : > { %1842 = vmatpush.msra.mxu0 %v1815_v2 }
 0x55a   : > { %v1496_v24 = vpop.f32.mrf.mxu3 }
 0x55b   : > { %v1501_v28 = vadd.f32 %v1496_v24, %v1335_v26 }
 0x5a4   : > { %v1655_v8 = vpop.f32.mrf.mxu2 }
 0x5a5   : > { %v1664_v10 = vadd.f32 %v1655_v8, %v1499_v5  ;;  %v1814_v5 = vld [vmem:[%s2513_s6 + $0x20] sm:$0xff] }
 0x5a6   : > { %1843 = vmatpush.msra.mxu0 %v1814_v5 }
 0x5a7   : > { %v1671_v12 = vadd.f32 %v2257_v6, %v1664_v10 }
 0x5a9   : > { %v1674_v18 = vadd.f32 %v1671_v12, %v2543_v9  ;;  %v1813_v12 = vld [vmem:[%s2513_s6 + $0x18] sm:$0xff] }
 0x5aa   : > { %1844 = vmatpush.msra.mxu0 %v1813_v12 }
 0x5ab   : > { %v1679_v21 = vsel %vm912_vm1, %v1674_v18, 0.0 }
 0x5ac   : > { %1680 = vadd.xlane.f32.xlu1 %v1679_v21  ;;  %v1658_v22 = vpop.f32.mrf.mxu2 }
 0x5ad   : > { %v1665_v13 = vadd.f32 %v1658_v22, %v1500_v19 }
 0x5af   : > { %v1672_v23 = vadd.f32 %v2257_v6, %v1665_v13  ;;  %v2259_v13 = vld [vmem:[%s2974_s4] ss:$0 sm:$0xff] }
 0x5b1   : > { %v1675_v27 = vadd.f32 %v1672_v23, %v2540_v7  ;;  %v2815_v7 = vsel %vm1693_vm7, %v2313_v34, %v1692_v37 }
 0x5b3   : > { %v1682_v30 = vsel %vm912_vm1, %v1675_v27, 0.0 }
 0x5b4   : > { %1683 = vadd.xlane.f32.xlu0 %v1682_v30  ;;  %v1661_v29 = vpop.f32.mrf.mxu2 }
 0x5b5   : > { %v1666_v14 = vadd.f32 %v1661_v29, %v1501_v28 }
 0x5b7   : > { %v1673_v31 = vadd.f32 %v2257_v6, %v1666_v14 }
 0x5b9   : > { %v1676_v9 = vadd.f32 %v1673_v31, %v2550_v11 }
 0x5bb   : > { %v1685_v32 = vsel %vm912_vm1, %v1676_v9, 0.0 }
 0x5bc   : > { %1686 = vadd.xlane.f32.xlu1 %v1685_v32 }
 0x61f   : > { %v1681_v38 = vpop.xlane.xlu1 %1680 }
 0x620   : > { %v1695_v39 = vmul.f32 %v2815_v7, %v1681_v38 }
 0x622   : > { %v1698_v47 = vsub.f32 %v1674_v18, %v1695_v39  ;;  %v2258_v18 = vld [vmem:[%s2972_s1] ss:$0 sm:$0xff] }
 0x624   : > { %v1701_v41 = vmul.f32 %v1698_v47, %v1698_v47 }
 0x626   : > { %v1704_v11 = vsel %vm912_vm1, %v1701_v41, 0.0  ;;  %v1811_v41 = vld [vmem:[%s2513_s6 + $0x8] sm:$0xff] }
 0x627   : > { %v1684_v42 = vpop.xlane.xlu0 %1683  ;;  %1705 = vadd.xlane.f32.xlu2 %v1704_v11  ;;  %v1810_v11 = vld [vmem:[%s2513_s6] sm:$0xff] }
 0x628   : > { %v1696_v43 = vmul.f32 %v2815_v7, %v1684_v42  ;;  %v2260_v42 = vld [vmem:[%s2975_s19] ss:$0 sm:$0xff] }
 0x62a   : > { %v2820_v44 = vsub.f32 %v1675_v27, %v1696_v43 }
 0x62c   : > { %v1702_v45 = vmul.f32 %v2820_v44, %v2820_v44 }
 0x62e   : > { %v1707_v46 = vsel %vm912_vm1, %v1702_v45, 0.0 }
 0x62f   : > { %1708 = vadd.xlane.f32.xlu1 %v1707_v46  ;;  %v1687_v48 = vpop.xlane.xlu1 %1686 }
 0x630   : > { %v1697_v49 = vmul.f32 %v2815_v7, %v1687_v48 }
 0x632   : > { %v2826_v20 = vsub.f32 %v1676_v9, %v1697_v49 }
 0x634   : > { %v1703_v50 = vmul.f32 %v2826_v20, %v2826_v20 }
 0x636   : > { %v1710_v51 = vsel %vm912_vm1, %v1703_v50, 0.0 }
 0x637   : > { %1711 = vadd.xlane.f32.xlu2 %v1710_v51 }
 0x69a   : > { %v1706_v40 = vpop.xlane.xlu2 %1705 }
 0x69b   : > { %v1713_v57 = vmul.f32 %v1706_v40, %v2815_v7 }
 0x69d   : > { %v1716_v58 = vadd.f32 1e-05, %v1713_v57 }
 0x69f   : > { %2314 = vrsqrt.f32 %v1716_v58  ;;  %vm1725_vm9 = vweird.f32 %v1716_v58 }
 0x6a2   : > { %v1709_v59 = vpop.xlane.xlu1 %1708 }
 0x6a3   : > { %v1714_v60 = vmul.f32 %v1709_v59, %v2815_v7 }
 0x6a5   : > { %v2315_v61 = vpop.eup %2314  ;;  %v1717_v52 = vadd.f32 1e-05, %v1714_v60 }
 0x6a6   : > { %v1720_v62 = vmul.f32 %v2315_v61, %v1716_v58  ;;  %vm1726_vm8 = vweird.f32 %v2315_v61 }
 0x6a7   : > { %2316 = vrsqrt.f32 %v1717_v52  ;;  %vm1727_vm10 = vmor %vm1725_vm9, %vm1726_vm8  ;;  %vm1735_vm12 = vweird.f32 %v1717_v52 }
 0x6a8   : > { %v1721_v1 = vmul.f32 %v2315_v61, %v1720_v62 }
 0x6aa   : > { %v1722_v25 = vmul.f32 0.5, %v1721_v1  ;;  %v1712_v3 = vpop.xlane.xlu2 %1711 }
 0x6ab   : > { %v1715_v4 = vmul.f32 %v1712_v3, %v2815_v7 }
 0x6ac   : > { %v1723_v6 = vsub.f32 1.5, %v1722_v25 }
 0x6ad   : > { %v2317_v8 = vpop.eup %2316  ;;  %v1718_v10 = vadd.f32 1e-05, %v1715_v4 }
 0x6ae   : > { %v1724_v16 = vmul.f32 %v2315_v61, %v1723_v6  ;;  %v1730_v17 = vmul.f32 %v2317_v8, %v1717_v52  ;;  %vm1736_vm11 = vweird.f32 %v2317_v8 }
 0x6af   : > { %2318 = vrsqrt.f32 %v1718_v10  ;;  %vm1737_vm13 = vmor %vm1735_vm12, %vm1736_vm11  ;;  %vm1745_vm15 = vweird.f32 %v1718_v10 }
 0x6b0   : > { %v1728_v19 = vsel %vm1727_vm10, %v2315_v61, %v1724_v16  ;;  %v1731_v21 = vmul.f32 %v2317_v8, %v1730_v17 }
 0x6b1   : > { %v1749_v22 = vmul.f32 %v1728_v19, %v1698_v47  ;;  %v1812_v47 = vld [vmem:[%s2513_s6 + $0x10] sm:$0xff] }
 0x6b2   : > { %v1732_v23 = vmul.f32 0.5, %v1731_v21  ;;  %1845 = vmatpush.msra.mxu0 %v1812_v47 }
 0x6b3   : > { %v1755_v24 = vmul.f32 %v2258_v18, %v1749_v22 }
 0x6b4   : > { %v1733_v26 = vsub.f32 1.5, %v1732_v23  ;;  %1846 = vmatpush.msra.mxu0 %v1811_v41 }
 0x6b5   : > { %v2319_v27 = vpop.eup %2318  ;;  %v1761_v28 = vadd.f32 %v2259_v13, %v1755_v24 }
 0x6b6   : > { %v1734_v30 = vmul.f32 %v2317_v8, %v1733_v26  ;;  %v1740_v29 = vmul.f32 %v2319_v27, %v1718_v10  ;;  %vm1746_vm14 = vweird.f32 %v2319_v27  ;;  %1847 = vmatpush.msra.mxu0 %v1810_v11 }
 0x6b7   : > { %2199 = vmatmul.msk.f32.vlgmr.msrb.gmra.mxu3 %vm912_vm1, %v1761_v28  ;;  %vm1747_vm0 = vmor %vm1745_vm15, %vm1746_vm14 }
 0x6b8   : > { %v1738_v14 = vsel %vm1737_vm13, %v2317_v8, %v1734_v30  ;;  %v1741_v31 = vmul.f32 %v2319_v27, %v1740_v29 }
 0x6b9   : > { %v1750_v9 = vmul.f32 %v1738_v14, %v2820_v44 }
 0x6ba   : > { %v1742_v32 = vmul.f32 0.5, %v1741_v31 }
 0x6bb   : > { %v1756_v33 = vmul.f32 %v2258_v18, %v1750_v9 }
 0x6bc   : > { %v1743_v34 = vsub.f32 1.5, %v1742_v32 }
 0x6bd   : > { %v1762_v35 = vadd.f32 %v2259_v13, %v1756_v33 }
 0x6be   : > { %v1744_v36 = vmul.f32 %v2319_v27, %v1743_v34 }
 0x6bf   : > { %2200 = vmatmul.msk.f32.gmra.mxu3 %vm912_vm1, %v1762_v35 }
 0x6c0   : > { %v1748_v15 = vsel %vm1747_vm0, %v2319_v27, %v1744_v36  ;;  %v2262_v36 = vld [vmem:[%s851_s2] ss:$0 sm:$0xff] }
 0x6c1   : > { %v1751_v37 = vmul.f32 %v1748_v15, %v2826_v20 }
 0x6c3   : > { %v1757_v38 = vmul.f32 %v2258_v18, %v1751_v37 }
 0x6c5   : > { %v1763_v39 = vadd.f32 %v2259_v13, %v1757_v38 }
 0x6c7   : > { %2201 = vmatmul.msk.f32.gmra.mxu3 %vm912_vm1, %v1763_v39 }
 0x73a   : > { %v1798_v43 = vpop.f32.mrf.mxu3 }
 0x73b   : > { %v1799_v44 = vadd.f32 %v2260_v42, %v1798_v43 }
 0x73d   : > { %v1807_v45 = vmax.f32 %v1799_v44, 0.0 }
 0x73f   : > { %2202 = vmatmul.msk.f32.vlgmr.msra.gmra.mxu0 %vm1822_vm2, %v1807_v45 }
 0x742   : > { %v1801_v46 = vpop.f32.mrf.mxu3 }
 0x743   : > { %v1802_v48 = vadd.f32 %v2260_v42, %v1801_v46 }
 0x745   : > { %v1808_v49 = vmax.f32 %v1802_v48, 0.0 }
 0x747   : > { %2203 = vmatmul.msk.f32.gmra.mxu0 %vm1822_vm2, %v1808_v49 }
 0x74a   : > { %v1804_v20 = vpop.f32.mrf.mxu3 }
 0x74b   : > { %v1805_v50 = vadd.f32 %v2260_v42, %v1804_v20 }
 0x74d   : > { %v1809_v51 = vmax.f32 %v1805_v50, 0.0 }
 0x74f   : > { %2204 = vmatmul.msk.f32.gmra.mxu0 %vm1822_vm2, %v1809_v51 }
 0x7bc   : > { %v1849_v54 = vpop.f32.mrf.mxu0 }
 0x7bd   : > { %v1850_v55 = vadd.f32 %v2261_v53, %v1849_v54 }
 0x7bf   : > { %v1858_v56 = vadd.f32 %v1850_v55, %v1761_v28 }
 0x7c1   : > { %v1863_v40 = vsel %vm912_vm1, %v1858_v56, 0.0 }
 0x7c2   : > { %1864 = vadd.xlane.f32.xlu1 %v1863_v40 }
 0x7c4   : > { %v1852_v57 = vpop.f32.mrf.mxu0 }
 0x7c5   : > { %v1853_v58 = vadd.f32 %v2261_v53, %v1852_v57 }
 0x7c7   : > { %v1859_v59 = vadd.f32 %v1853_v58, %v1762_v35 }
 0x7c9   : > { %v1866_v60 = vsel %vm912_vm1, %v1859_v59, 0.0 }
 0x7ca   : > { %1867 = vadd.xlane.f32.xlu2 %v1866_v60 }
 0x7cc   : > { %v1855_v61 = vpop.f32.mrf.mxu0 }
 0x7cd   : > { %v1856_v52 = vadd.f32 %v2261_v53, %v1855_v61 }
 0x7cf   : > { %v1860_v62 = vadd.f32 %v1856_v52, %v1763_v39 }
 0x7d1   : > { %v1869_v63 = vsel %vm912_vm1, %v1860_v62, 0.0 }
 0x7d2   : > { %1870 = vadd.xlane.f32.xlu1 %v1869_v63 }
 0x835   : > { %v1865_v0 = vpop.xlane.xlu1 %1864 }
 0x836   : > { %v1872_v1 = vmul.f32 %v1865_v0, %v2815_v7 }
 0x838   : > { %v1875_v2 = vsub.f32 %v1858_v56, %v1872_v1 }
 0x83a   : > { %v1878_v25 = vmul.f32 %v1875_v2, %v1875_v2 }
 0x83c   : > { %v1881_v3 = vsel %vm912_vm1, %v1878_v25, 0.0 }
 0x83d   : > { %v1868_v4 = vpop.xlane.xlu2 %1867  ;;  %1882 = vadd.xlane.f32.xlu2 %v1881_v3 }
 0x83e   : > { %v1873_v5 = vmul.f32 %v1868_v4, %v2815_v7 }
 0x840   : > { %v1876_v6 = vsub.f32 %v1859_v59, %v1873_v5 }
 0x842   : > { %v1879_v8 = vmul.f32 %v1876_v6, %v1876_v6 }
 0x844   : > { %v1884_v10 = vsel %vm912_vm1, %v1879_v8, 0.0 }
 0x845   : > { %1885 = vadd.xlane.f32.xlu1 %v1884_v10  ;;  %v1871_v12 = vpop.xlane.xlu1 %1870 }
 0x846   : > { %v1874_v16 = vmul.f32 %v1871_v12, %v2815_v7 }
 0x848   : > { %v1877_v17 = vsub.f32 %v1860_v62, %v1874_v16 }
 0x84a   : > { %v1880_v18 = vmul.f32 %v1877_v17, %v1877_v17 }
 0x84c   : > { %v1887_v19 = vsel %vm912_vm1, %v1880_v18, 0.0 }
 0x84d   : > { %1888 = vadd.xlane.f32.xlu2 %v1887_v19 }
 0x8b0   : > { %v1883_v21 = vpop.xlane.xlu2 %1882 }
 0x8b1   : > { %v1890_v22 = vmul.f32 %v1883_v21, %v2815_v7 }
 0x8b3   : > { %v1893_v13 = vadd.f32 1e-05, %v1890_v22 }
 0x8b5   : > { %2320 = vrsqrt.f32 %v1893_v13  ;;  %vm1902_vm4 = vweird.f32 %v1893_v13 }
 0x8b8   : > { %v1886_v23 = vpop.xlane.xlu1 %1885 }
 0x8b9   : > { %v1891_v24 = vmul.f32 %v1886_v23, %v2815_v7 }
 0x8bb   : > { %v2321_v26 = vpop.eup %2320  ;;  %v1894_v27 = vadd.f32 1e-05, %v1891_v24 }
 0x8bc   : > { %v1897_v28 = vmul.f32 %v2321_v26, %v1893_v13  ;;  %vm1903_vm3 = vweird.f32 %v2321_v26 }
 0x8bd   : > { %2322 = vrsqrt.f32 %v1894_v27  ;;  %vm1904_vm5 = vmor %vm1902_vm4, %vm1903_vm3  ;;  %vm1912_vm7 = vweird.f32 %v1894_v27 }
 0x8be   : > { %v1898_v30 = vmul.f32 %v2321_v26, %v1897_v28 }
 0x8c0   : > { %v1899_v29 = vmul.f32 0.5, %v1898_v30  ;;  %v1889_v14 = vpop.xlane.xlu2 %1888 }
 0x8c1   : > { %v1892_v31 = vmul.f32 %v1889_v14, %v2815_v7  ;;  %v2263_v7 = vld [vmem:[%s854_s13] ss:$0 sm:$0xff] }
 0x8c2   : > { %v1900_v9 = vsub.f32 1.5, %v1899_v29 }
 0x8c3   : > { %v2323_v32 = vpop.eup %2322  ;;  %v1895_v33 = vadd.f32 1e-05, %v1892_v31 }
 0x8c4   : > { %v1901_v34 = vmul.f32 %v2321_v26, %v1900_v9  ;;  %v1907_v35 = vmul.f32 %v2323_v32, %v1894_v27  ;;  %vm1913_vm6 = vweird.f32 %v2323_v32 }
 0x8c5   : > { %2324 = vrsqrt.f32 %v1895_v33  ;;  %vm1914_vm8 = vmor %vm1912_vm7, %vm1913_vm6  ;;  %vm1922_vm10 = vweird.f32 %v1895_v33 }
 0x8c6   : > { %v1905_v15 = vsel %vm1904_vm5, %v2321_v26, %v1901_v34  ;;  %v1908_v37 = vmul.f32 %v2323_v32, %v1907_v35 }
 0x8c7   : > { %v1926_v38 = vmul.f32 %v1905_v15, %v1875_v2 }
 0x8c8   : > { %v1909_v39 = vmul.f32 0.5, %v1908_v37 }
 0x8c9   : > { %v1932_v47 = vmul.f32 %v2262_v36, %v1926_v38 }
 0x8ca   : > { %v1910_v41 = vsub.f32 1.5, %v1909_v39 }
 0x8cb   : > { %v2325_v11 = vpop.eup %2324  ;;  %v1938_v42 = vadd.f32 %v2263_v7, %v1932_v47 }
 0x8cc   : > { %v1911_v43 = vmul.f32 %v2323_v32, %v1910_v41  ;;  %v1917_v44 = vmul.f32 %v2325_v11, %v1895_v33  ;;  %vm1923_vm9 = vweird.f32 %v2325_v11 }
 0x8cd   : > { %1941 = vst.msk [vmem:[#allocation2] sm:$0xff] %vm912_vm1, %v1938_v42  ;;  %vm1924_vm11 = vmor %vm1922_vm10, %vm1923_vm9 }
 0x8ce   : > { %1944 = vst.msk [vmem:[%s2978_s25] sm:$0xff] %vm912_vm1, %v1938_v42  ;;  %v1915_v45 = vsel %vm1914_vm8, %v2323_v32, %v1911_v43  ;;  %v1918_v46 = vmul.f32 %v2325_v11, %v1917_v44 }
 0x8cf   : > { %v1927_v48 = vmul.f32 %v1915_v45, %v1876_v6 }
 0x8d0   : > { %v1919_v49 = vmul.f32 0.5, %v1918_v46 }
 0x8d1   : > { %v1933_v20 = vmul.f32 %v2262_v36, %v1927_v48 }
 0x8d2   : > { %v1920_v50 = vsub.f32 1.5, %v1919_v49 }
 0x8d3   : > { %v1939_v51 = vadd.f32 %v2263_v7, %v1933_v20 }
 0x8d4   : > { %v1921_v53 = vmul.f32 %v2325_v11, %v1920_v50 }
 0x8d5   : > { %1942 = vst.msk [vmem:[#allocation2 + $0x8] sm:$0xff] %vm912_vm1, %v1939_v51 }
 0x8d6   : > { %1945 = vst.msk [vmem:[%s2978_s25 + $0x8] sm:$0xff] %vm912_vm1, %v1939_v51  ;;  %v1925_v54 = vsel %vm1924_vm11, %v2325_v11, %v1921_v53 }
 0x8d7   : > { %v1928_v55 = vmul.f32 %v1925_v54, %v1877_v17 }
 0x8d9   : > { %v1934_v56 = vmul.f32 %v2262_v36, %v1928_v55 }
 0x8db   : > { %v1940_v40 = vadd.f32 %v2263_v7, %v1934_v56 }
 0x8dd   : > { %1943 = vst.msk [vmem:[#allocation2 + $0x10] sm:$0xff] %vm912_vm1, %v1940_v40 }
 0x8de   : > { %1946 = vst.msk [vmem:[%s2978_s25 + $0x10] sm:$0xff] %vm912_vm1, %v1940_v40 }
 0x8df PF: > { %s2979_s8 = sld [smem:[#allocation3_spill]] }
 0x8e5   : > { %s30_s1 = sadd.s32 1, %s2979_s8  }
 0x8e6   : > { %p27_p5 = scmp.ge.s32.totalorder %s30_s1, 4  }
 0x8e8   :  { %29 = sbr.rel (!%p27_p5) target bundleno = 15 (0xf), region = 175 }

</bundles_post_ra>
